<compile_context>
chip_gen: v6e
topology: v6e:2x2x1
jax: 0.10.0
libtpu: 0.0.40
codegen_flags: <defaults>
</compile_context>

<pallas_src>
import functools
import math

import jax
import jax.numpy as jnp
from jax import lax
from jax.experimental import pallas as pl
from jax.experimental.pallas import tpu as pltpu


def _cross_attention_kernel(x_ref, y_ref,
                            wq_ref, bq_ref, wk_ref, bk_ref,
                            wv_ref, bv_ref, wo_ref, bo_ref,
                            o_ref,
                            q_scr, m_scr, l_scr, acc_scr,
                            *, n_heads, d_head, scale, compute_dtype):
    """Grid = (batch, q-tile [parallel], kv-tile [arbitrary/reduction])."""
    ki = pl.program_id(2)
    nk = pl.num_programs(2)

    # ---- prologue for each (b, q-tile): project Q once, reset softmax state ----
    @pl.when(ki == 0)
    def _():
        q = jnp.dot(x_ref[...], wq_ref[...],
                    preferred_element_type=jnp.float32) + bq_ref[...]
        # Fold the 1/sqrt(d_head) scale into Q: O(Lq*De) instead of O(H*Lq*Lkv).
        q_scr[...] = (q * scale).astype(q_scr.dtype)
        m_scr[...] = jnp.full(m_scr.shape, -jnp.inf, m_scr.dtype)
        l_scr[...] = jnp.zeros(l_scr.shape, l_scr.dtype)
        acc_scr[...] = jnp.zeros(acc_scr.shape, acc_scr.dtype)

    # ---- K / V projections for this key/value tile (MXU, fp32 accumulate) ----
    y = y_ref[...]                                                   # (tkv, Dc)
    k = (jnp.dot(y, wk_ref[...], preferred_element_type=jnp.float32)
         + bk_ref[...]).astype(compute_dtype)                        # (tkv, De)
    v = (jnp.dot(y, wv_ref[...], preferred_element_type=jnp.float32)
         + bv_ref[...]).astype(compute_dtype)                        # (tkv, De)

    # ---- per-head online softmax: 2-D column slices, no transposes ----
    for h in range(n_heads):
        hs = slice(h * d_head, (h + 1) * d_head)
        qh = q_scr[:, hs]                                            # (tq,  dh)
        kh = k[:, hs]                                                # (tkv, dh)
        vh = v[:, hs]                                                # (tkv, dh)
        # q @ k^T expressed as a transposed contraction (no materialized k.T).
        s = lax.dot_general(qh, kh, (((1,), (1,)), ((), ())),
                            preferred_element_type=jnp.float32)      # (tq, tkv)
        m_prev = m_scr[h]                                            # (tq, 1)
        m_new = jnp.maximum(m_prev, jnp.max(s, axis=-1, keepdims=True))
        alpha = jnp.exp(m_prev - m_new)
        p = jnp.exp(s - m_new)                                       # unnormalized
        l_scr[h] = alpha * l_scr[h] + jnp.sum(p, axis=-1, keepdims=True)
        pv = jnp.dot(p.astype(compute_dtype), vh,
                     preferred_element_type=jnp.float32)             # (tq, dh)
        acc_scr[:, hs] = alpha * acc_scr[:, hs] + pv
        m_scr[h] = m_new

    # ---- epilogue: single deferred normalization, out-proj, lane-dense store ----
    @pl.when(ki == nk - 1)
    def _():
        for h in range(n_heads):
            hs = slice(h * d_head, (h + 1) * d_head)
            acc_scr[:, hs] = acc_scr[:, hs] * pl.reciprocal(l_scr[h], approx=True)
        out = jnp.dot(acc_scr[...].astype(compute_dtype), wo_ref[...],
                      preferred_element_type=jnp.float32) + bo_ref[...]
        o_ref[...] = out.astype(o_ref.dtype)


def prepare_params(params, compute_dtype=jnp.bfloat16):
    """Transpose PyTorch-layout (out, in) weights to (in, out) and cast ONCE."""
    def w(name):
        return jnp.asarray(params[name].T, compute_dtype)

    def b(name):
        return jnp.asarray(params[name], jnp.float32).reshape(1, -1)

    return dict(wq=w('wq'), wk=w('wk'), wv=w('wv'), wo=w('wo'),
                bq=b('bq'), bk=b('bk'), bv=b('bv'), bo=b('bo'))


def _pick_tile(length, tile):
    # Use the requested tile when it divides the sequence length; otherwise fall
    # back to the full (unpadded) length so no masking is needed.
    return tile if (length >= tile and length % tile == 0) else length


def cross_attention(x, y, prepared, *, n_heads,
                    q_tile=128, kv_tile=128, compute_dtype=jnp.bfloat16):
    """x: (B, Lq, d_embed), y: (B, Lkv, d_cross) -> (B, Lq, d_embed)."""
    B, Lq, De = x.shape
    By, Lkv, Dc = y.shape
    assert By == B and De % n_heads == 0
    d_head = De // n_heads
    scale = 1.0 / math.sqrt(d_head)

    tq = _pick_tile(Lq, q_tile)
    tkv = _pick_tile(Lkv, kv_tile)
    grid = (B, Lq // tq, Lkv // tkv)

    kernel = functools.partial(_cross_attention_kernel,
                               n_heads=n_heads, d_head=d_head,
                               scale=scale, compute_dtype=compute_dtype)

    # Constant index maps: weights/biases are DMA'd once and never re-fetched.
    # TODO(synk): pipeline_mode=pl.Buffered(1) would also drop the second (unused)
    # pipeline buffer for these constant operands.
    def const(shape):
        return pl.BlockSpec(shape, lambda b, qi, ki: (0,) * len(shape))

    return pl.pallas_call(
        kernel,
        out_shape=jax.ShapeDtypeStruct((B, Lq, De), x.dtype),
        grid_spec=pltpu.PrefetchScalarGridSpec(
            num_scalar_prefetch=0,
            grid=grid,
            in_specs=[
                pl.BlockSpec((None, tq, De), lambda b, qi, ki: (b, qi, 0)),    # x tile
                pl.BlockSpec((None, tkv, Dc), lambda b, qi, ki: (b, ki, 0)),   # y tile
                const((De, De)), const((1, De)),   # wq, bq
                const((Dc, De)), const((1, De)),   # wk, bk
                const((Dc, De)), const((1, De)),   # wv, bv
                const((De, De)), const((1, De)),   # wo, bo
            ],
            out_specs=pl.BlockSpec((None, tq, De), lambda b, qi, ki: (b, qi, 0)),
            scratch_shapes=[
                pltpu.VMEM((tq, De), compute_dtype),         # scaled Q (per q-tile)
                pltpu.VMEM((n_heads, tq, 1), jnp.float32),   # running max
                pltpu.VMEM((n_heads, tq, 1), jnp.float32),   # running sum
                pltpu.VMEM((tq, De), jnp.float32),           # unnormalized PV accum
            ]),
        compiler_params=pltpu.CompilerParams(
            dimension_semantics=("parallel", "parallel", "arbitrary"),
            vmem_limit_bytes=64 * 1024 * 1024),
    )(x.astype(compute_dtype), y.astype(compute_dtype),
      prepared['wq'], prepared['bq'], prepared['wk'], prepared['bk'],
      prepared['wv'], prepared['bv'], prepared['wo'], prepared['bo'])


def reference_cross_attention(x, y, params, *, n_heads):
    """Pure-JAX fp32 reference mirroring the PyTorch forward."""
    B, Lq, De = x.shape
    d_head = De // n_heads
    q = x @ params['wq'].T + params['bq']
    k = y @ params['wk'].T + params['bk']
    v = y @ params['wv'].T + params['bv']
    q = q.reshape(B, Lq, n_heads, d_head).transpose(0, 2, 1, 3)
    k = k.reshape(B, -1, n_heads, d_head).transpose(0, 2, 1, 3)
    v = v.reshape(B, -1, n_heads, d_head).transpose(0, 2, 1, 3)
    w = jnp.einsum('bhqd,bhkd->bhqk', q, k) / math.sqrt(d_head)
    w = jax.nn.softmax(w, axis=-1)
    o = jnp.einsum('bhqk,bhkd->bhqd', w, v)
    o = o.transpose(0, 2, 1, 3).reshape(B, Lq, De)
    return o @ params['wo'].T + params['bo']


if __name__ == "__main__":
    def init_linear(kw, kb, d_in, d_out):
        # PyTorch-style uniform init; weight layout (out, in).
        bound = 1.0 / math.sqrt(d_in)
        w = jax.random.uniform(kw, (d_out, d_in), jnp.float32, -bound, bound)
        b = jax.random.uniform(kb, (d_out,), jnp.float32, -bound, bound)
        return w, b

    def make_case(key, B, Lq, Lkv, n_heads, d_embed, d_cross):
        keys = jax.random.split(key, 10)
        wq, bq = init_linear(keys[0], keys[1], d_embed, d_embed)
        wk, bk = init_linear(keys[2], keys[3], d_cross, d_embed)
        wv, bv = init_linear(keys[4], keys[5], d_cross, d_embed)
        wo, bo = init_linear(keys[6], keys[7], d_embed, d_embed)
        params = dict(wq=wq, bq=bq, wk=wk, bk=bk, wv=wv, bv=bv, wo=wo, bo=bo)
        x = jax.random.normal(keys[8], (B, Lq, d_embed), jnp.float32)
        y = jax.random.normal(keys[9], (B, Lkv, d_cross), jnp.float32)
        return x, y, params

    k1, k2 = jax.random.split(jax.random.PRNGKey(0))

    # Case 1: small shapes, fp32 compute path (single kv tile) — tight check.
    n_heads = 4
    x, y, params = make_case(k1, B=2, Lq=8, Lkv=16,
                             n_heads=n_heads, d_embed=32, d_cross=16)
    out = cross_attention(x, y, prepare_params(params, jnp.float32),
                          n_heads=n_heads, compute_dtype=jnp.float32)
    out = jax.block_until_ready(out)
    ref = reference_cross_attention(x, y, params, n_heads=n_heads)
    assert out.shape == ref.shape
    assert jnp.allclose(out, ref, atol=1e-2, rtol=1e-2), "fp32 path mismatch"

    # Case 2: exercises the flash tiling (2 q-tiles x 3 kv-tiles) on the bf16 MXU path.
    n_heads = 8
    x, y, params = make_case(k2, B=2, Lq=256, Lkv=384,
                             n_heads=n_heads, d_embed=64, d_cross=32)
    out = cross_attention(x, y, prepare_params(params, jnp.bfloat16),
                          n_heads=n_heads, compute_dtype=jnp.bfloat16)
    out = jax.block_until_ready(out)
    ref = reference_cross_attention(x, y, params, n_heads=n_heads)
    assert out.shape == ref.shape
    assert jnp.allclose(out, ref, atol=5e-2, rtol=5e-2), "bf16 path mismatch"

    print("KERNEL_OK")
</pallas_src>

<mosaic_0001>
module attributes {stable_mosaic.version = 11 : i64} {
  func.func @_cross_attention_kernel(%arg0: i32, %arg1: i32, %arg2: i32, %arg3: memref<1x8x32xf32, #tpu.memory_space<vmem>>, %arg4: memref<1x16x16xf32, #tpu.memory_space<vmem>>, %arg5: memref<32x32xf32, #tpu.memory_space<vmem>>, %arg6: memref<1x32xf32, #tpu.memory_space<vmem>>, %arg7: memref<16x32xf32, #tpu.memory_space<vmem>>, %arg8: memref<1x32xf32, #tpu.memory_space<vmem>>, %arg9: memref<16x32xf32, #tpu.memory_space<vmem>>, %arg10: memref<1x32xf32, #tpu.memory_space<vmem>>, %arg11: memref<32x32xf32, #tpu.memory_space<vmem>>, %arg12: memref<1x32xf32, #tpu.memory_space<vmem>>, %arg13: memref<1x8x32xf32, #tpu.memory_space<vmem>>, %arg14: memref<8x32xf32, #tpu.memory_space<vmem>>, %arg15: memref<4x8x1xf32, #tpu.memory_space<vmem>>, %arg16: memref<4x8x1xf32, #tpu.memory_space<vmem>>, %arg17: memref<8x32xf32, #tpu.memory_space<vmem>>) attributes {dimension_semantics = [#tpu.dimension_semantics<parallel>, #tpu.dimension_semantics<parallel>, #tpu.dimension_semantics<arbitrary>], iteration_bounds = array<i64: 2, 1, 1>, scalar_prefetch = 0 : i64, scratch_operands = 4 : i64, tpu.core_type = #tpu.core_type<tc>, window_params = [{transform_indices = @transform_0, window_bounds = array<i64: 1, 8, 32>}, {transform_indices = @transform_1, window_bounds = array<i64: 1, 16, 16>}, {pipeline_mode = #tpu.pipeline_mode<synchronous>, transform_indices = @transform_2, window_bounds = array<i64: 32, 32>}, {pipeline_mode = #tpu.pipeline_mode<synchronous>, transform_indices = @transform_3, window_bounds = array<i64: 1, 32>}, {pipeline_mode = #tpu.pipeline_mode<synchronous>, transform_indices = @transform_4, window_bounds = array<i64: 16, 32>}, {pipeline_mode = #tpu.pipeline_mode<synchronous>, transform_indices = @transform_5, window_bounds = array<i64: 1, 32>}, {pipeline_mode = #tpu.pipeline_mode<synchronous>, transform_indices = @transform_6, window_bounds = array<i64: 16, 32>}, {pipeline_mode = #tpu.pipeline_mode<synchronous>, transform_indices = @transform_7, window_bounds = array<i64: 1, 32>}, {pipeline_mode = #tpu.pipeline_mode<synchronous>, transform_indices = @transform_8, window_bounds = array<i64: 32, 32>}, {pipeline_mode = #tpu.pipeline_mode<synchronous>, transform_indices = @transform_9, window_bounds = array<i64: 1, 32>}, {transform_indices = @transform_10, window_bounds = array<i64: 1, 8, 32>}]} {
    %c0_i32 = arith.constant 0 : i32
    %0 = arith.cmpi eq, %arg2, %c0_i32 : i32
    %1 = arith.extui %0 : i1 to i32
    %c0_i32_0 = arith.constant 0 : i32
    %2 = arith.cmpi ne, %1, %c0_i32_0 : i32
    scf.if %2 {
      %c0_96 = arith.constant 0 : index
      %c0_97 = arith.constant 0 : index
      %c0_98 = arith.constant 0 : index
      %146 = vector.load %arg3[%c0_96, %c0_97, %c0_98] : memref<1x8x32xf32, #tpu.memory_space<vmem>>, vector<1x8x32xf32>
      %147 = vector.shape_cast %146 : vector<1x8x32xf32> to vector<8x32xf32>
      %c0_99 = arith.constant 0 : index
      %c0_100 = arith.constant 0 : index
      %148 = vector.load %arg5[%c0_99, %c0_100] : memref<32x32xf32, #tpu.memory_space<vmem>>, vector<32x32xf32>
      %cst_101 = arith.constant dense<0.000000e+00> : vector<8x32xf32>
      %149 = tpu.matmul %147, %148, %cst_101 {dimension_numbers = #tpu.dot_dimension_numbers<[1], [0], [0], [1], [0, 0, 1, 1], [], []>} : vector<8x32xf32>, vector<32x32xf32>, vector<8x32xf32> -> vector<8x32xf32>
      %c0_102 = arith.constant 0 : index
      %c0_103 = arith.constant 0 : index
      %150 = vector.load %arg6[%c0_102, %c0_103] : memref<1x32xf32, #tpu.memory_space<vmem>>, vector<1x32xf32>
      %151 = vector.broadcast %150 : vector<1x32xf32> to vector<8x32xf32>
      %152 = arith.addf %149, %151 : vector<8x32xf32>
      %cst_104 = arith.constant 0.353553385 : f32
      %153 = vector.broadcast %cst_104 : f32 to vector<8x32xf32>
      %154 = arith.mulf %152, %153 : vector<8x32xf32>
      %c0_105 = arith.constant 0 : index
      %c0_106 = arith.constant 0 : index
      %155 = vector.load %arg14[%c0_105, %c0_106] : memref<8x32xf32, #tpu.memory_space<vmem>>, vector<8x32xf32>
      tpu.vector_store %arg14[%c0_105, %c0_106], %154 {strides = array<i32>} : memref<8x32xf32, #tpu.memory_space<vmem>>, vector<8x32xf32>,
      %cst_107 = arith.constant 0xFF800000 : f32
      %156 = vector.broadcast %cst_107 : f32 to vector<4x8x1xf32>
      %c0_108 = arith.constant 0 : index
      %c0_109 = arith.constant 0 : index
      %c0_110 = arith.constant 0 : index
      %157 = vector.load %arg15[%c0_108, %c0_109, %c0_110] : memref<4x8x1xf32, #tpu.memory_space<vmem>>, vector<4x8x1xf32>
      tpu.vector_store %arg15[%c0_108, %c0_109, %c0_110], %156 {strides = array<i32>} : memref<4x8x1xf32, #tpu.memory_space<vmem>>, vector<4x8x1xf32>,
      %cst_111 = arith.constant 0.000000e+00 : f32
      %158 = vector.broadcast %cst_111 : f32 to vector<4x8x1xf32>
      %c0_112 = arith.constant 0 : index
      %c0_113 = arith.constant 0 : index
      %c0_114 = arith.constant 0 : index
      %159 = vector.load %arg16[%c0_112, %c0_113, %c0_114] : memref<4x8x1xf32, #tpu.memory_space<vmem>>, vector<4x8x1xf32>
      tpu.vector_store %arg16[%c0_112, %c0_113, %c0_114], %158 {strides = array<i32>} : memref<4x8x1xf32, #tpu.memory_space<vmem>>, vector<4x8x1xf32>,
      %cst_115 = arith.constant 0.000000e+00 : f32
      %160 = vector.broadcast %cst_115 : f32 to vector<8x32xf32>
      %c0_116 = arith.constant 0 : index
      %c0_117 = arith.constant 0 : index
      %161 = vector.load %arg17[%c0_116, %c0_117] : memref<8x32xf32, #tpu.memory_space<vmem>>, vector<8x32xf32>
      tpu.vector_store %arg17[%c0_116, %c0_117], %160 {strides = array<i32>} : memref<8x32xf32, #tpu.memory_space<vmem>>, vector<8x32xf32>,
    } else {
    }
    %c0 = arith.constant 0 : index
    %c0_1 = arith.constant 0 : index
    %c0_2 = arith.constant 0 : index
    %3 = vector.load %arg4[%c0, %c0_1, %c0_2] : memref<1x16x16xf32, #tpu.memory_space<vmem>>, vector<1x16x16xf32>
    %4 = vector.shape_cast %3 : vector<1x16x16xf32> to vector<16x16xf32>
    %c0_3 = arith.constant 0 : index
    %c0_4 = arith.constant 0 : index
    %5 = vector.load %arg7[%c0_3, %c0_4] : memref<16x32xf32, #tpu.memory_space<vmem>>, vector<16x32xf32>
    %cst = arith.constant dense<0.000000e+00> : vector<16x32xf32>
    %6 = tpu.matmul %4, %5, %cst {dimension_numbers = #tpu.dot_dimension_numbers<[1], [0], [0], [1], [0, 0, 1, 1], [], []>} : vector<16x16xf32>, vector<16x32xf32>, vector<16x32xf32> -> vector<16x32xf32>
    %c0_5 = arith.constant 0 : index
    %c0_6 = arith.constant 0 : index
    %7 = vector.load %arg8[%c0_5, %c0_6] : memref<1x32xf32, #tpu.memory_space<vmem>>, vector<1x32xf32>
    %8 = vector.broadcast %7 : vector<1x32xf32> to vector<16x32xf32>
    %9 = arith.addf %6, %8 : vector<16x32xf32>
    %c0_7 = arith.constant 0 : index
    %c0_8 = arith.constant 0 : index
    %10 = vector.load %arg9[%c0_7, %c0_8] : memref<16x32xf32, #tpu.memory_space<vmem>>, vector<16x32xf32>
    %cst_9 = arith.constant dense<0.000000e+00> : vector<16x32xf32>
    %11 = tpu.matmul %4, %10, %cst_9 {dimension_numbers = #tpu.dot_dimension_numbers<[1], [0], [0], [1], [0, 0, 1, 1], [], []>} : vector<16x16xf32>, vector<16x32xf32>, vector<16x32xf32> -> vector<16x32xf32>
    %c0_10 = arith.constant 0 : index
    %c0_11 = arith.constant 0 : index
    %12 = vector.load %arg10[%c0_10, %c0_11] : memref<1x32xf32, #tpu.memory_space<vmem>>, vector<1x32xf32>
    %13 = vector.broadcast %12 : vector<1x32xf32> to vector<16x32xf32>
    %14 = arith.addf %11, %13 : vector<16x32xf32>
    %c0_12 = arith.constant 0 : index
    %c0_13 = arith.constant 0 : index
    %15 = vector.load %arg14[%c0_12, %c0_13] : memref<8x32xf32, #tpu.memory_space<vmem>>, vector<8x8xf32>
    %16 = vector.extract_strided_slice %9 {offsets = [0, 0], sizes = [16, 8], strides = [1, 1]} : vector<16x32xf32> to vector<16x8xf32>
    %17 = vector.extract_strided_slice %14 {offsets = [0, 0], sizes = [16, 8], strides = [1, 1]} : vector<16x32xf32> to vector<16x8xf32>
    %cst_14 = arith.constant dense<0.000000e+00> : vector<8x16xf32>
    %18 = tpu.matmul %15, %16, %cst_14 {dimension_numbers = #tpu.dot_dimension_numbers<[1], [1], [0], [0], [0, 0, 1, 0], [], []>} : vector<8x8xf32>, vector<16x8xf32>, vector<8x16xf32> -> vector<8x16xf32>
    %c0_15 = arith.constant 0 : index
    %c0_16 = arith.constant 0 : index
    %c0_17 = arith.constant 0 : index
    %19 = vector.load %arg15[%c0_15, %c0_16, %c0_17] : memref<4x8x1xf32, #tpu.memory_space<vmem>>, vector<1x8x1xf32>
    %20 = vector.shape_cast %19 : vector<1x8x1xf32> to vector<8x1xf32>
    %cst_18 = arith.constant dense<0xFF800000> : vector<8xf32>
    %21 = vector.multi_reduction <maximumf>, %18, %cst_18 [1] : vector<8x16xf32> to vector<8xf32>
    %22 = vector.shape_cast %21 : vector<8xf32> to vector<8x1xf32>
    %23 = arith.maximumf %20, %22 : vector<8x1xf32>
    %24 = arith.subf %20, %23 : vector<8x1xf32>
    %25 = math.exp %24 : vector<8x1xf32>
    %26 = vector.broadcast %23 : vector<8x1xf32> to vector<8x16xf32>
    %27 = arith.subf %18, %26 : vector<8x16xf32>
    %28 = math.exp %27 : vector<8x16xf32>
    %c0_19 = arith.constant 0 : index
    %c0_20 = arith.constant 0 : index
    %c0_21 = arith.constant 0 : index
    %29 = vector.load %arg16[%c0_19, %c0_20, %c0_21] : memref<4x8x1xf32, #tpu.memory_space<vmem>>, vector<1x8x1xf32>
    %30 = vector.shape_cast %29 : vector<1x8x1xf32> to vector<8x1xf32>
    %31 = arith.mulf %25, %30 : vector<8x1xf32>
    %cst_22 = arith.constant dense<0.000000e+00> : vector<8xf32>
    %32 = vector.multi_reduction <add>, %28, %cst_22 [1] : vector<8x16xf32> to vector<8xf32>
    %33 = vector.shape_cast %32 : vector<8xf32> to vector<8x1xf32>
    %34 = arith.addf %31, %33 : vector<8x1xf32>
    %c0_23 = arith.constant 0 : index
    %c0_24 = arith.constant 0 : index
    %c0_25 = arith.constant 0 : index
    %35 = vector.load %arg16[%c0_23, %c0_24, %c0_25] : memref<4x8x1xf32, #tpu.memory_space<vmem>>, vector<1x8x1xf32>
    %36 = vector.shape_cast %35 : vector<1x8x1xf32> to vector<8x1xf32>
    %37 = vector.shape_cast %34 : vector<8x1xf32> to vector<1x8x1xf32>
    tpu.vector_store %arg16[%c0_23, %c0_24, %c0_25], %37 {strides = array<i32>} : memref<4x8x1xf32, #tpu.memory_space<vmem>>, vector<1x8x1xf32>,
    %cst_26 = arith.constant dense<0.000000e+00> : vector<8x8xf32>
    %38 = tpu.matmul %28, %17, %cst_26 {dimension_numbers = #tpu.dot_dimension_numbers<[1], [0], [0], [1], [0, 0, 1, 1], [], []>} : vector<8x16xf32>, vector<16x8xf32>, vector<8x8xf32> -> vector<8x8xf32>
    %c0_27 = arith.constant 0 : index
    %c0_28 = arith.constant 0 : index
    %39 = vector.load %arg17[%c0_27, %c0_28] : memref<8x32xf32, #tpu.memory_space<vmem>>, vector<8x8xf32>
    %40 = vector.broadcast %25 : vector<8x1xf32> to vector<8x8xf32>
    %41 = arith.mulf %40, %39 : vector<8x8xf32>
    %42 = arith.addf %41, %38 : vector<8x8xf32>
    %c0_29 = arith.constant 0 : index
    %c0_30 = arith.constant 0 : index
    %43 = vector.load %arg17[%c0_29, %c0_30] : memref<8x32xf32, #tpu.memory_space<vmem>>, vector<8x8xf32>
    tpu.vector_store %arg17[%c0_29, %c0_30], %42 {strides = array<i32>} : memref<8x32xf32, #tpu.memory_space<vmem>>, vector<8x8xf32>,
    %c0_31 = arith.constant 0 : index
    %c0_32 = arith.constant 0 : index
    %c0_33 = arith.constant 0 : index
    %44 = vector.load %arg15[%c0_31, %c0_32, %c0_33] : memref<4x8x1xf32, #tpu.memory_space<vmem>>, vector<1x8x1xf32>
    %45 = vector.shape_cast %44 : vector<1x8x1xf32> to vector<8x1xf32>
    %46 = vector.shape_cast %23 : vector<8x1xf32> to vector<1x8x1xf32>
    tpu.vector_store %arg15[%c0_31, %c0_32, %c0_33], %46 {strides = array<i32>} : memref<4x8x1xf32, #tpu.memory_space<vmem>>, vector<1x8x1xf32>,
    %c0_34 = arith.constant 0 : index
    %c8 = arith.constant 8 : index
    %47 = vector.load %arg14[%c0_34, %c8] : memref<8x32xf32, #tpu.memory_space<vmem>>, vector<8x8xf32>
    %48 = vector.extract_strided_slice %9 {offsets = [0, 8], sizes = [16, 8], strides = [1, 1]} : vector<16x32xf32> to vector<16x8xf32>
    %49 = vector.extract_strided_slice %14 {offsets = [0, 8], sizes = [16, 8], strides = [1, 1]} : vector<16x32xf32> to vector<16x8xf32>
    %cst_35 = arith.constant dense<0.000000e+00> : vector<8x16xf32>
    %50 = tpu.matmul %47, %48, %cst_35 {dimension_numbers = #tpu.dot_dimension_numbers<[1], [1], [0], [0], [0, 0, 1, 0], [], []>} : vector<8x8xf32>, vector<16x8xf32>, vector<8x16xf32> -> vector<8x16xf32>
    %c1 = arith.constant 1 : index
    %c0_36 = arith.constant 0 : index
    %c0_37 = arith.constant 0 : index
    %51 = vector.load %arg15[%c1, %c0_36, %c0_37] : memref<4x8x1xf32, #tpu.memory_space<vmem>>, vector<1x8x1xf32>
    %52 = vector.shape_cast %51 : vector<1x8x1xf32> to vector<8x1xf32>
    %cst_38 = arith.constant dense<0xFF800000> : vector<8xf32>
    %53 = vector.multi_reduction <maximumf>, %50, %cst_38 [1] : vector<8x16xf32> to vector<8xf32>
    %54 = vector.shape_cast %53 : vector<8xf32> to vector<8x1xf32>
    %55 = arith.maximumf %52, %54 : vector<8x1xf32>
    %56 = arith.subf %52, %55 : vector<8x1xf32>
    %57 = math.exp %56 : vector<8x1xf32>
    %58 = vector.broadcast %55 : vector<8x1xf32> to vector<8x16xf32>
    %59 = arith.subf %50, %58 : vector<8x16xf32>
    %60 = math.exp %59 : vector<8x16xf32>
    %c1_39 = arith.constant 1 : index
    %c0_40 = arith.constant 0 : index
    %c0_41 = arith.constant 0 : index
    %61 = vector.load %arg16[%c1_39, %c0_40, %c0_41] : memref<4x8x1xf32, #tpu.memory_space<vmem>>, vector<1x8x1xf32>
    %62 = vector.shape_cast %61 : vector<1x8x1xf32> to vector<8x1xf32>
    %63 = arith.mulf %57, %62 : vector<8x1xf32>
    %cst_42 = arith.constant dense<0.000000e+00> : vector<8xf32>
    %64 = vector.multi_reduction <add>, %60, %cst_42 [1] : vector<8x16xf32> to vector<8xf32>
    %65 = vector.shape_cast %64 : vector<8xf32> to vector<8x1xf32>
    %66 = arith.addf %63, %65 : vector<8x1xf32>
    %c1_43 = arith.constant 1 : index
    %c0_44 = arith.constant 0 : index
    %c0_45 = arith.constant 0 : index
    %67 = vector.load %arg16[%c1_43, %c0_44, %c0_45] : memref<4x8x1xf32, #tpu.memory_space<vmem>>, vector<1x8x1xf32>
    %68 = vector.shape_cast %67 : vector<1x8x1xf32> to vector<8x1xf32>
    %69 = vector.shape_cast %66 : vector<8x1xf32> to vector<1x8x1xf32>
    tpu.vector_store %arg16[%c1_43, %c0_44, %c0_45], %69 {strides = array<i32>} : memref<4x8x1xf32, #tpu.memory_space<vmem>>, vector<1x8x1xf32>,
    %cst_46 = arith.constant dense<0.000000e+00> : vector<8x8xf32>
    %70 = tpu.matmul %60, %49, %cst_46 {dimension_numbers = #tpu.dot_dimension_numbers<[1], [0], [0], [1], [0, 0, 1, 1], [], []>} : vector<8x16xf32>, vector<16x8xf32>, vector<8x8xf32> -> vector<8x8xf32>
    %c0_47 = arith.constant 0 : index
    %c8_48 = arith.constant 8 : index
    %71 = vector.load %arg17[%c0_47, %c8_48] : memref<8x32xf32, #tpu.memory_space<vmem>>, vector<8x8xf32>
    %72 = vector.broadcast %57 : vector<8x1xf32> to vector<8x8xf32>
    %73 = arith.mulf %72, %71 : vector<8x8xf32>
    %74 = arith.addf %73, %70 : vector<8x8xf32>
    %c0_49 = arith.constant 0 : index
    %c8_50 = arith.constant 8 : index
    %75 = vector.load %arg17[%c0_49, %c8_50] : memref<8x32xf32, #tpu.memory_space<vmem>>, vector<8x8xf32>
    tpu.vector_store %arg17[%c0_49, %c8_50], %74 {strides = array<i32>} : memref<8x32xf32, #tpu.memory_space<vmem>>, vector<8x8xf32>,
    %c1_51 = arith.constant 1 : index
    %c0_52 = arith.constant 0 : index
    %c0_53 = arith.constant 0 : index
    %76 = vector.load %arg15[%c1_51, %c0_52, %c0_53] : memref<4x8x1xf32, #tpu.memory_space<vmem>>, vector<1x8x1xf32>
    %77 = vector.shape_cast %76 : vector<1x8x1xf32> to vector<8x1xf32>
    %78 = vector.shape_cast %55 : vector<8x1xf32> to vector<1x8x1xf32>
    tpu.vector_store %arg15[%c1_51, %c0_52, %c0_53], %78 {strides = array<i32>} : memref<4x8x1xf32, #tpu.memory_space<vmem>>, vector<1x8x1xf32>,
    %c0_54 = arith.constant 0 : index
    %c16 = arith.constant 16 : index
    %79 = vector.load %arg14[%c0_54, %c16] : memref<8x32xf32, #tpu.memory_space<vmem>>, vector<8x8xf32>
    %80 = vector.extract_strided_slice %9 {offsets = [0, 16], sizes = [16, 8], strides = [1, 1]} : vector<16x32xf32> to vector<16x8xf32>
    %81 = vector.extract_strided_slice %14 {offsets = [0, 16], sizes = [16, 8], strides = [1, 1]} : vector<16x32xf32> to vector<16x8xf32>
    %cst_55 = arith.constant dense<0.000000e+00> : vector<8x16xf32>
    %82 = tpu.matmul %79, %80, %cst_55 {dimension_numbers = #tpu.dot_dimension_numbers<[1], [1], [0], [0], [0, 0, 1, 0], [], []>} : vector<8x8xf32>, vector<16x8xf32>, vector<8x16xf32> -> vector<8x16xf32>
    %c2 = arith.constant 2 : index
    %c0_56 = arith.constant 0 : index
    %c0_57 = arith.constant 0 : index
    %83 = vector.load %arg15[%c2, %c0_56, %c0_57] : memref<4x8x1xf32, #tpu.memory_space<vmem>>, vector<1x8x1xf32>
    %84 = vector.shape_cast %83 : vector<1x8x1xf32> to vector<8x1xf32>
    %cst_58 = arith.constant dense<0xFF800000> : vector<8xf32>
    %85 = vector.multi_reduction <maximumf>, %82, %cst_58 [1] : vector<8x16xf32> to vector<8xf32>
    %86 = vector.shape_cast %85 : vector<8xf32> to vector<8x1xf32>
    %87 = arith.maximumf %84, %86 : vector<8x1xf32>
    %88 = arith.subf %84, %87 : vector<8x1xf32>
    %89 = math.exp %88 : vector<8x1xf32>
    %90 = vector.broadcast %87 : vector<8x1xf32> to vector<8x16xf32>
    %91 = arith.subf %82, %90 : vector<8x16xf32>
    %92 = math.exp %91 : vector<8x16xf32>
    %c2_59 = arith.constant 2 : index
    %c0_60 = arith.constant 0 : index
    %c0_61 = arith.constant 0 : index
    %93 = vector.load %arg16[%c2_59, %c0_60, %c0_61] : memref<4x8x1xf32, #tpu.memory_space<vmem>>, vector<1x8x1xf32>
    %94 = vector.shape_cast %93 : vector<1x8x1xf32> to vector<8x1xf32>
    %95 = arith.mulf %89, %94 : vector<8x1xf32>
    %cst_62 = arith.constant dense<0.000000e+00> : vector<8xf32>
    %96 = vector.multi_reduction <add>, %92, %cst_62 [1] : vector<8x16xf32> to vector<8xf32>
    %97 = vector.shape_cast %96 : vector<8xf32> to vector<8x1xf32>
    %98 = arith.addf %95, %97 : vector<8x1xf32>
    %c2_63 = arith.constant 2 : index
    %c0_64 = arith.constant 0 : index
    %c0_65 = arith.constant 0 : index
    %99 = vector.load %arg16[%c2_63, %c0_64, %c0_65] : memref<4x8x1xf32, #tpu.memory_space<vmem>>, vector<1x8x1xf32>
    %100 = vector.shape_cast %99 : vector<1x8x1xf32> to vector<8x1xf32>
    %101 = vector.shape_cast %98 : vector<8x1xf32> to vector<1x8x1xf32>
    tpu.vector_store %arg16[%c2_63, %c0_64, %c0_65], %101 {strides = array<i32>} : memref<4x8x1xf32, #tpu.memory_space<vmem>>, vector<1x8x1xf32>,
    %cst_66 = arith.constant dense<0.000000e+00> : vector<8x8xf32>
    %102 = tpu.matmul %92, %81, %cst_66 {dimension_numbers = #tpu.dot_dimension_numbers<[1], [0], [0], [1], [0, 0, 1, 1], [], []>} : vector<8x16xf32>, vector<16x8xf32>, vector<8x8xf32> -> vector<8x8xf32>
    %c0_67 = arith.constant 0 : index
    %c16_68 = arith.constant 16 : index
    %103 = vector.load %arg17[%c0_67, %c16_68] : memref<8x32xf32, #tpu.memory_space<vmem>>, vector<8x8xf32>
    %104 = vector.broadcast %89 : vector<8x1xf32> to vector<8x8xf32>
    %105 = arith.mulf %104, %103 : vector<8x8xf32>
    %106 = arith.addf %105, %102 : vector<8x8xf32>
    %c0_69 = arith.constant 0 : index
    %c16_70 = arith.constant 16 : index
    %107 = vector.load %arg17[%c0_69, %c16_70] : memref<8x32xf32, #tpu.memory_space<vmem>>, vector<8x8xf32>
    tpu.vector_store %arg17[%c0_69, %c16_70], %106 {strides = array<i32>} : memref<8x32xf32, #tpu.memory_space<vmem>>, vector<8x8xf32>,
    %c2_71 = arith.constant 2 : index
    %c0_72 = arith.constant 0 : index
    %c0_73 = arith.constant 0 : index
    %108 = vector.load %arg15[%c2_71, %c0_72, %c0_73] : memref<4x8x1xf32, #tpu.memory_space<vmem>>, vector<1x8x1xf32>
    %109 = vector.shape_cast %108 : vector<1x8x1xf32> to vector<8x1xf32>
    %110 = vector.shape_cast %87 : vector<8x1xf32> to vector<1x8x1xf32>
    tpu.vector_store %arg15[%c2_71, %c0_72, %c0_73], %110 {strides = array<i32>} : memref<4x8x1xf32, #tpu.memory_space<vmem>>, vector<1x8x1xf32>,
    %c0_74 = arith.constant 0 : index
    %c24 = arith.constant 24 : index
    %111 = vector.load %arg14[%c0_74, %c24] : memref<8x32xf32, #tpu.memory_space<vmem>>, vector<8x8xf32>
    %112 = vector.extract_strided_slice %9 {offsets = [0, 24], sizes = [16, 8], strides = [1, 1]} : vector<16x32xf32> to vector<16x8xf32>
    %113 = vector.extract_strided_slice %14 {offsets = [0, 24], sizes = [16, 8], strides = [1, 1]} : vector<16x32xf32> to vector<16x8xf32>
    %cst_75 = arith.constant dense<0.000000e+00> : vector<8x16xf32>
    %114 = tpu.matmul %111, %112, %cst_75 {dimension_numbers = #tpu.dot_dimension_numbers<[1], [1], [0], [0], [0, 0, 1, 0], [], []>} : vector<8x8xf32>, vector<16x8xf32>, vector<8x16xf32> -> vector<8x16xf32>
    %c3 = arith.constant 3 : index
    %c0_76 = arith.constant 0 : index
    %c0_77 = arith.constant 0 : index
    %115 = vector.load %arg15[%c3, %c0_76, %c0_77] : memref<4x8x1xf32, #tpu.memory_space<vmem>>, vector<1x8x1xf32>
    %116 = vector.shape_cast %115 : vector<1x8x1xf32> to vector<8x1xf32>
    %cst_78 = arith.constant dense<0xFF800000> : vector<8xf32>
    %117 = vector.multi_reduction <maximumf>, %114, %cst_78 [1] : vector<8x16xf32> to vector<8xf32>
    %118 = vector.shape_cast %117 : vector<8xf32> to vector<8x1xf32>
    %119 = arith.maximumf %116, %118 : vector<8x1xf32>
    %120 = arith.subf %116, %119 : vector<8x1xf32>
    %121 = math.exp %120 : vector<8x1xf32>
    %122 = vector.broadcast %119 : vector<8x1xf32> to vector<8x16xf32>
    %123 = arith.subf %114, %122 : vector<8x16xf32>
    %124 = math.exp %123 : vector<8x16xf32>
    %c3_79 = arith.constant 3 : index
    %c0_80 = arith.constant 0 : index
    %c0_81 = arith.constant 0 : index
    %125 = vector.load %arg16[%c3_79, %c0_80, %c0_81] : memref<4x8x1xf32, #tpu.memory_space<vmem>>, vector<1x8x1xf32>
    %126 = vector.shape_cast %125 : vector<1x8x1xf32> to vector<8x1xf32>
    %127 = arith.mulf %121, %126 : vector<8x1xf32>
    %cst_82 = arith.constant dense<0.000000e+00> : vector<8xf32>
    %128 = vector.multi_reduction <add>, %124, %cst_82 [1] : vector<8x16xf32> to vector<8xf32>
    %129 = vector.shape_cast %128 : vector<8xf32> to vector<8x1xf32>
    %130 = arith.addf %127, %129 : vector<8x1xf32>
    %c3_83 = arith.constant 3 : index
    %c0_84 = arith.constant 0 : index
    %c0_85 = arith.constant 0 : index
    %131 = vector.load %arg16[%c3_83, %c0_84, %c0_85] : memref<4x8x1xf32, #tpu.memory_space<vmem>>, vector<1x8x1xf32>
    %132 = vector.shape_cast %131 : vector<1x8x1xf32> to vector<8x1xf32>
    %133 = vector.shape_cast %130 : vector<8x1xf32> to vector<1x8x1xf32>
    tpu.vector_store %arg16[%c3_83, %c0_84, %c0_85], %133 {strides = array<i32>} : memref<4x8x1xf32, #tpu.memory_space<vmem>>, vector<1x8x1xf32>,
    %cst_86 = arith.constant dense<0.000000e+00> : vector<8x8xf32>
    %134 = tpu.matmul %124, %113, %cst_86 {dimension_numbers = #tpu.dot_dimension_numbers<[1], [0], [0], [1], [0, 0, 1, 1], [], []>} : vector<8x16xf32>, vector<16x8xf32>, vector<8x8xf32> -> vector<8x8xf32>
    %c0_87 = arith.constant 0 : index
    %c24_88 = arith.constant 24 : index
    %135 = vector.load %arg17[%c0_87, %c24_88] : memref<8x32xf32, #tpu.memory_space<vmem>>, vector<8x8xf32>
    %136 = vector.broadcast %121 : vector<8x1xf32> to vector<8x8xf32>
    %137 = arith.mulf %136, %135 : vector<8x8xf32>
    %138 = arith.addf %137, %134 : vector<8x8xf32>
    %c0_89 = arith.constant 0 : index
    %c24_90 = arith.constant 24 : index
    %139 = vector.load %arg17[%c0_89, %c24_90] : memref<8x32xf32, #tpu.memory_space<vmem>>, vector<8x8xf32>
    tpu.vector_store %arg17[%c0_89, %c24_90], %138 {strides = array<i32>} : memref<8x32xf32, #tpu.memory_space<vmem>>, vector<8x8xf32>,
    %c3_91 = arith.constant 3 : index
    %c0_92 = arith.constant 0 : index
    %c0_93 = arith.constant 0 : index
    %140 = vector.load %arg15[%c3_91, %c0_92, %c0_93] : memref<4x8x1xf32, #tpu.memory_space<vmem>>, vector<1x8x1xf32>
    %141 = vector.shape_cast %140 : vector<1x8x1xf32> to vector<8x1xf32>
    %142 = vector.shape_cast %119 : vector<8x1xf32> to vector<1x8x1xf32>
    tpu.vector_store %arg15[%c3_91, %c0_92, %c0_93], %142 {strides = array<i32>} : memref<4x8x1xf32, #tpu.memory_space<vmem>>, vector<1x8x1xf32>,
    %c0_i32_94 = arith.constant 0 : i32
    %143 = arith.cmpi eq, %arg2, %c0_i32_94 : i32
    %144 = arith.extui %143 : i1 to i32
    %c0_i32_95 = arith.constant 0 : i32
    %145 = arith.cmpi ne, %144, %c0_i32_95 : i32
    scf.if %145 {
      %c0_96 = arith.constant 0 : index
      %c0_97 = arith.constant 0 : index
      %146 = vector.load %arg17[%c0_96, %c0_97] : memref<8x32xf32, #tpu.memory_space<vmem>>, vector<8x8xf32>
      %c0_98 = arith.constant 0 : index
      %c0_99 = arith.constant 0 : index
      %c0_100 = arith.constant 0 : index
      %147 = vector.load %arg16[%c0_98, %c0_99, %c0_100] : memref<4x8x1xf32, #tpu.memory_space<vmem>>, vector<1x8x1xf32>
      %148 = vector.shape_cast %147 : vector<1x8x1xf32> to vector<8x1xf32>
      %149 = tpu.reciprocal %148 {approx = true} : vector<8x1xf32> -> vector<8x1xf32>
      %150 = vector.broadcast %149 : vector<8x1xf32> to vector<8x8xf32>
      %151 = arith.mulf %146, %150 : vector<8x8xf32>
      %c0_101 = arith.constant 0 : index
      %c0_102 = arith.constant 0 : index
      %152 = vector.load %arg17[%c0_101, %c0_102] : memref<8x32xf32, #tpu.memory_space<vmem>>, vector<8x8xf32>
      tpu.vector_store %arg17[%c0_101, %c0_102], %151 {strides = array<i32>} : memref<8x32xf32, #tpu.memory_space<vmem>>, vector<8x8xf32>,
      %c0_103 = arith.constant 0 : index
      %c8_104 = arith.constant 8 : index
      %153 = vector.load %arg17[%c0_103, %c8_104] : memref<8x32xf32, #tpu.memory_space<vmem>>, vector<8x8xf32>
      %c1_105 = arith.constant 1 : index
      %c0_106 = arith.constant 0 : index
      %c0_107 = arith.constant 0 : index
      %154 = vector.load %arg16[%c1_105, %c0_106, %c0_107] : memref<4x8x1xf32, #tpu.memory_space<vmem>>, vector<1x8x1xf32>
      %155 = vector.shape_cast %154 : vector<1x8x1xf32> to vector<8x1xf32>
      %156 = tpu.reciprocal %155 {approx = true} : vector<8x1xf32> -> vector<8x1xf32>
      %157 = vector.broadcast %156 : vector<8x1xf32> to vector<8x8xf32>
      %158 = arith.mulf %153, %157 : vector<8x8xf32>
      %c0_108 = arith.constant 0 : index
      %c8_109 = arith.constant 8 : index
      %159 = vector.load %arg17[%c0_108, %c8_109] : memref<8x32xf32, #tpu.memory_space<vmem>>, vector<8x8xf32>
      tpu.vector_store %arg17[%c0_108, %c8_109], %158 {strides = array<i32>} : memref<8x32xf32, #tpu.memory_space<vmem>>, vector<8x8xf32>,
      %c0_110 = arith.constant 0 : index
      %c16_111 = arith.constant 16 : index
      %160 = vector.load %arg17[%c0_110, %c16_111] : memref<8x32xf32, #tpu.memory_space<vmem>>, vector<8x8xf32>
      %c2_112 = arith.constant 2 : index
      %c0_113 = arith.constant 0 : index
      %c0_114 = arith.constant 0 : index
      %161 = vector.load %arg16[%c2_112, %c0_113, %c0_114] : memref<4x8x1xf32, #tpu.memory_space<vmem>>, vector<1x8x1xf32>
      %162 = vector.shape_cast %161 : vector<1x8x1xf32> to vector<8x1xf32>
      %163 = tpu.reciprocal %162 {approx = true} : vector<8x1xf32> -> vector<8x1xf32>
      %164 = vector.broadcast %163 : vector<8x1xf32> to vector<8x8xf32>
      %165 = arith.mulf %160, %164 : vector<8x8xf32>
      %c0_115 = arith.constant 0 : index
      %c16_116 = arith.constant 16 : index
      %166 = vector.load %arg17[%c0_115, %c16_116] : memref<8x32xf32, #tpu.memory_space<vmem>>, vector<8x8xf32>
      tpu.vector_store %arg17[%c0_115, %c16_116], %165 {strides = array<i32>} : memref<8x32xf32, #tpu.memory_space<vmem>>, vector<8x8xf32>,
      %c0_117 = arith.constant 0 : index
      %c24_118 = arith.constant 24 : index
      %167 = vector.load %arg17[%c0_117, %c24_118] : memref<8x32xf32, #tpu.memory_space<vmem>>, vector<8x8xf32>
      %c3_119 = arith.constant 3 : index
      %c0_120 = arith.constant 0 : index
      %c0_121 = arith.constant 0 : index
      %168 = vector.load %arg16[%c3_119, %c0_120, %c0_121] : memref<4x8x1xf32, #tpu.memory_space<vmem>>, vector<1x8x1xf32>
      %169 = vector.shape_cast %168 : vector<1x8x1xf32> to vector<8x1xf32>
      %170 = tpu.reciprocal %169 {approx = true} : vector<8x1xf32> -> vector<8x1xf32>
      %171 = vector.broadcast %170 : vector<8x1xf32> to vector<8x8xf32>
      %172 = arith.mulf %167, %171 : vector<8x8xf32>
      %c0_122 = arith.constant 0 : index
      %c24_123 = arith.constant 24 : index
      %173 = vector.load %arg17[%c0_122, %c24_123] : memref<8x32xf32, #tpu.memory_space<vmem>>, vector<8x8xf32>
      tpu.vector_store %arg17[%c0_122, %c24_123], %172 {strides = array<i32>} : memref<8x32xf32, #tpu.memory_space<vmem>>, vector<8x8xf32>,
      %c0_124 = arith.constant 0 : index
      %c0_125 = arith.constant 0 : index
      %174 = vector.load %arg17[%c0_124, %c0_125] : memref<8x32xf32, #tpu.memory_space<vmem>>, vector<8x32xf32>
      %c0_126 = arith.constant 0 : index
      %c0_127 = arith.constant 0 : index
      %175 = vector.load %arg11[%c0_126, %c0_127] : memref<32x32xf32, #tpu.memory_space<vmem>>, vector<32x32xf32>
      %cst_128 = arith.constant dense<0.000000e+00> : vector<8x32xf32>
      %176 = tpu.matmul %174, %175, %cst_128 {dimension_numbers = #tpu.dot_dimension_numbers<[1], [0], [0], [1], [0, 0, 1, 1], [], []>} : vector<8x32xf32>, vector<32x32xf32>, vector<8x32xf32> -> vector<8x32xf32>
      %c0_129 = arith.constant 0 : index
      %c0_130 = arith.constant 0 : index
      %177 = vector.load %arg12[%c0_129, %c0_130] : memref<1x32xf32, #tpu.memory_space<vmem>>, vector<1x32xf32>
      %178 = vector.broadcast %177 : vector<1x32xf32> to vector<8x32xf32>
      %179 = arith.addf %176, %178 : vector<8x32xf32>
      %c0_131 = arith.constant 0 : index
      %c0_132 = arith.constant 0 : index
      %c0_133 = arith.constant 0 : index
      %180 = vector.load %arg13[%c0_131, %c0_132, %c0_133] : memref<1x8x32xf32, #tpu.memory_space<vmem>>, vector<1x8x32xf32>
      %181 = vector.shape_cast %180 : vector<1x8x32xf32> to vector<8x32xf32>
      %182 = vector.shape_cast %179 : vector<8x32xf32> to vector<1x8x32xf32>
      tpu.vector_store %arg13[%c0_131, %c0_132, %c0_133], %182 {strides = array<i32>} : memref<1x8x32xf32, #tpu.memory_space<vmem>>, vector<1x8x32xf32>,
    } else {
    }
    return
  }
  func.func @transform_0(%arg0: i32, %arg1: i32, %arg2: i32) -> (i32, i32, i32) {
    %c0_i32 = arith.constant 0 : i32
    %c0_i32_0 = arith.constant 0 : i32
    return %arg0, %arg1, %c0_i32 : i32, i32, i32
  }
  func.func @transform_1(%arg0: i32, %arg1: i32, %arg2: i32) -> (i32, i32, i32) {
    %c0_i32 = arith.constant 0 : i32
    %c0_i32_0 = arith.constant 0 : i32
    return %arg0, %arg2, %c0_i32 : i32, i32, i32
  }
  func.func @transform_2(%arg0: i32, %arg1: i32, %arg2: i32) -> (i32, i32) {
    %c0_i32 = arith.constant 0 : i32
    %c0_i32_0 = arith.constant 0 : i32
    %c0_i32_1 = arith.constant 0 : i32
    return %c0_i32, %c0_i32_0 : i32, i32
  }
  func.func @transform_3(%arg0: i32, %arg1: i32, %arg2: i32) -> (i32, i32) {
    %c0_i32 = arith.constant 0 : i32
    %c0_i32_0 = arith.constant 0 : i32
    %c0_i32_1 = arith.constant 0 : i32
    return %c0_i32, %c0_i32_0 : i32, i32
  }
  func.func @transform_4(%arg0: i32, %arg1: i32, %arg2: i32) -> (i32, i32) {
    %c0_i32 = arith.constant 0 : i32
    %c0_i32_0 = arith.constant 0 : i32
    %c0_i32_1 = arith.constant 0 : i32
    return %c0_i32, %c0_i32_0 : i32, i32
  }
  func.func @transform_5(%arg0: i32, %arg1: i32, %arg2: i32) -> (i32, i32) {
    %c0_i32 = arith.constant 0 : i32
    %c0_i32_0 = arith.constant 0 : i32
    %c0_i32_1 = arith.constant 0 : i32
    return %c0_i32, %c0_i32_0 : i32, i32
  }
  func.func @transform_6(%arg0: i32, %arg1: i32, %arg2: i32) -> (i32, i32) {
    %c0_i32 = arith.constant 0 : i32
    %c0_i32_0 = arith.constant 0 : i32
    %c0_i32_1 = arith.constant 0 : i32
    return %c0_i32, %c0_i32_0 : i32, i32
  }
  func.func @transform_7(%arg0: i32, %arg1: i32, %arg2: i32) -> (i32, i32) {
    %c0_i32 = arith.constant 0 : i32
    %c0_i32_0 = arith.constant 0 : i32
    %c0_i32_1 = arith.constant 0 : i32
    return %c0_i32, %c0_i32_0 : i32, i32
  }
  func.func @transform_8(%arg0: i32, %arg1: i32, %arg2: i32) -> (i32, i32) {
    %c0_i32 = arith.constant 0 : i32
    %c0_i32_0 = arith.constant 0 : i32
    %c0_i32_1 = arith.constant 0 : i32
    return %c0_i32, %c0_i32_0 : i32, i32
  }
  func.func @transform_9(%arg0: i32, %arg1: i32, %arg2: i32) -> (i32, i32) {
    %c0_i32 = arith.constant 0 : i32
    %c0_i32_0 = arith.constant 0 : i32
    %c0_i32_1 = arith.constant 0 : i32
    return %c0_i32, %c0_i32_0 : i32, i32
  }
  func.func @transform_10(%arg0: i32, %arg1: i32, %arg2: i32) -> (i32, i32, i32) {
    %c0_i32 = arith.constant 0 : i32
    %c0_i32_0 = arith.constant 0 : i32
    return %arg0, %arg1, %c0_i32 : i32, i32, i32
  }
}

</mosaic_0001>

<bundles_post_ra>
// kernel: tpu_custom_call.1
= control target key start
LH: loop header
LB: loop body
LE: loop exit
PB: predicated region body
PF: predicated region fallthrough
CT: control target
= control target key end

     0   :  { %s2970_s0 = inlined_call_operand.hbm [shape: f32[2,8,32], index: 0, kind: input, shape index: {}]   ;;  %s2971_s1 = inlined_call_operand.hbm [shape: f32[2,16,16], index: 1, kind: input, shape index: {}]   ;;  %s2972_s2 = inlined_call_operand.hbm [shape: f32[32,32], index: 2, kind: input, shape index: {}]   ;;  %s2973_s3 = inlined_call_operand.vmem [shape: f32[1,32], index: 3, kind: input, shape index: {}]   ;;  %s2974_s4 = inlined_call_operand.hbm [shape: f32[16,32], index: 4, kind: input, shape index: {}]   ;;  %s2975_s5 = inlined_call_operand.vmem [shape: f32[1,32], index: 5, kind: input, shape index: {}]   ;;  %s2976_s6 = inlined_call_operand.hbm [shape: f32[16,32], index: 6, kind: input, shape index: {}]   ;;  %s2977_s7 = inlined_call_operand.vmem [shape: f32[1,32], index: 7, kind: input, shape index: {}]   ;;  %s2978_s8 = inlined_call_operand.hbm [shape: f32[32,32], index: 8, kind: input, shape index: {}]   ;;  %s2979_s9 = inlined_call_operand.vmem [shape: f32[1,32], index: 9, kind: input, shape index: {}]   ;;  %s2980_s10 = inlined_call_operand.hbm [shape: f32[2,8,32], index: 10, kind: output, shape index: {}]  }
   0x1   :  { %2986 = sst [smem:[#allocation28_spill]] %s2970_s0 }
   0x2   :  { %2987 = sst [smem:[#allocation29_spill]] %s2972_s2 }
   0x3   :  { %2988 = sst [smem:[#allocation30_spill]] %s2974_s4 }
   0x4   :  { %2989 = sst [smem:[#allocation31_spill]] %s2976_s6 }
   0x5   :  { %2990 = sst [smem:[#allocation32_spill]] %s2978_s8 }
   0x6   :  { %15 = vsyncpa [#allocation7], 0 }
   0x7   :  { %17 = vsyncpa [#allocation7 + $0x1], 0 }
   0x8   :  { %18 = vsyncpa [#allocation10], 0 }
   0x9   :  { %20 = vsyncpa [#allocation10 + $0x1], 0 }
   0xa   :  { %21 = vsyncpa [#allocation13], 0 }
   0xb   :  { %22 = vsyncpa [#allocation16], 0 }
   0xc   :  { %23 = vsyncpa [#allocation8], 0 }
   0xd   :  { %25 = vsyncpa [#allocation8 + $0x1], 0  ;;  %s2536_s13 = smov 0   ;;  %s2538_s14 = smov 0  }
   0xe   :  { %s2540_s15 = smov 0   ;;  %s2542_s16 = smov 0  }
   0xf   :  { %s2544_s17 = smov 0   ;;  %s2546_s18 = smov 0  }
  0x10 LB: > { %2991 = sst [smem:[#allocation24_spill]] %s2448_s15  ;;  %s2567_s19 = sadd.s32 4294967295, %s2460_s18   ;;  %s2460_s18 = sphi %s2546_s18, %s31_s18   ;;  %s2456_s17 = sphi %s2544_s17, %s3017_s17   ;;  %s2452_s16 = sphi %s2542_s16, %s3016_s16   ;;  %s2448_s15 = sphi %s2540_s15, %s3012_s15   ;;  %s2444_s14 = sphi %s2538_s14, %s3015_s14   ;;  %s2440_s13 = sphi %s2536_s13, %s3014_s13  }
  0x11   : > { %p1874_p0 = scmp.ge.s32.totalorder %s2460_s18, 1  ;;  %p73_p1 = scmp.eq.s32.totalorder %s2567_s19, 0 }
  0x12   : > { %p307_p2 = scmp.lt.s32.totalorder %s2460_s18, 3  ;;  %s2462_s21 = smov [#allocation11]  }
  0x13   : > { %s319_s22 = sshll.u32 %s2462_s21, 4  ;;  %s2463_s24 = smov [#allocation12]   ;;  %s320_s22 = int_to_ptr.vmem [resolvable:$true] %s319_s22 }
  0x14   : > { %p2572_p3 = pnand %p1874_p0, %p307_p2  ;;  %s335_s25 = sshll.u32 %s2463_s24, 4  ;;  %s336_s25 = int_to_ptr.vmem [resolvable:$true] %s335_s25 }
  0x15   : > { %s2464_s26 = smov [#allocation14]   ;;  %s2215_s28 = scalar_lea.vmem %s320_s22, 512 }
  0x16   : > { %p2080_p4 = pneg %p2572_p3  ;;  %s351_s27 = sshll.u32 %s2464_s26, 4  ;;  %s352_s27 = int_to_ptr.vmem [resolvable:$true] %s351_s27 }
  0x17   : > { %p2216_p8 = scmp.ne.s32.totalorder %s320_s22, %s2215_s28  ;;  %p2223_p11 = scmp.lt.s32.totalorder %s320_s22, %s320_s22 }
  0x18   : > { %p2581_p6 = pnand %p2080_p4, %p73_p1  ;;  %p2224_p12 = scmp.lt.s32.totalorder %s2215_s28, %s2215_s28 }
  0x1a   : > { %p2206_p7 = pneg %p2581_p6  ;;  %p2225_p13 = por %p2224_p12, %p2223_p11 }
  0x1c   : > { %p2218_p9 = pnand %p2216_p8, %p2206_p7 }
  0x1e   : > { %p2219_p10 = pneg %p2218_p9 }
  0x20   : > { %p2226_p0 = pnand %p2225_p13, %p2219_p10 }
  0x22   : > { %2229 = shalt.err (!%p2226_p0)
}
  0x23   : > { %s2981_s29 = smov 128   ;;  %s2982_s30 = smov 8  }
  0x24   : > { %s2994_s2 = sld [smem:[#allocation29_spill]]  ;;  %s2241_s21 = scalar_lea.vmem %s336_s25, 256 }
  0x25   : > { %p2242_p2 = scmp.ne.s32.totalorder %s336_s25, %s2241_s21  ;;  %p2249_p9 = scmp.lt.s32.totalorder %s336_s25, %s336_s25 }
  0x26   : > { %p2250_p10 = scmp.lt.s32.totalorder %s2241_s21, %s2241_s21 }
  0x27   : > { %p2244_p4 = pnand %p2242_p2, %p2206_p7 }
  0x28   : > { %p2251_p11 = por %p2250_p10, %p2249_p9 }
  0x29   : > { %p2245_p8 = pneg %p2244_p4 }
  0x2a   : > { %2083 = dma.hbm_to_vmem [thread:$0]  (!%p2581_p6), %s2994_s2, 512, %s320_s22, [#allocation10], %s2981_s29, %s2981_s29, %s2982_s30  }
  0x2b   : > { %p2252_p12 = pnand %p2251_p11, %p2245_p8 }
  0x2d   : > { %2255 = shalt.err (!%p2252_p12)
}
  0x2e   : > { %s2995_s4 = sld [smem:[#allocation30_spill]]  ;;  %s2267_s22 = scalar_lea.vmem %s352_s27, 256 }
  0x2f   : > { %p2268_p13 = scmp.ne.s32.totalorder %s352_s27, %s2267_s22  ;;  %p2275_p4 = scmp.lt.s32.totalorder %s352_s27, %s352_s27 }
  0x30   : > { %p2276_p8 = scmp.lt.s32.totalorder %s2267_s22, %s2267_s22 }
  0x31   : > { %p2270_p0 = pnand %p2268_p13, %p2206_p7 }
  0x32   : > { %p2277_p9 = por %p2276_p8, %p2275_p4 }
  0x33   : > { %p2271_p2 = pneg %p2270_p0 }
  0x34   : > { %2086 = dma.hbm_to_vmem [thread:$0]  (!%p2581_p6), %s2995_s4, 256, %s336_s25, [#allocation13], %s2981_s29, %s2981_s29, %s2982_s30  }
  0x35   : > { %p2278_p10 = pnand %p2277_p9, %p2271_p2 }
  0x37   : > { %2281 = shalt.err (!%p2278_p10)
}
  0x38   : > { %s2996_s6 = sld [smem:[#allocation31_spill]]  ;;  %s2467_s25 = smov [#allocation15]  }
  0x39   : > { %s367_s12 = sshll.u32 %s2467_s25, 4  ;;  %s368_s12 = int_to_ptr.vmem [resolvable:$true] %s367_s12 }
  0x3a   : > { %s2293_s21 = scalar_lea.vmem %s368_s12, 512  ;;  %p2301_p0 = scmp.lt.s32.totalorder %s368_s12, %s368_s12 }
  0x3b   : > { %p2294_p11 = scmp.ne.s32.totalorder %s368_s12, %s2293_s21  ;;  %p2302_p2 = scmp.lt.s32.totalorder %s2293_s21, %s2293_s21 }
  0x3d   : > { %p2296_p12 = pnand %p2294_p11, %p2206_p7  ;;  %p2303_p4 = por %p2302_p2, %p2301_p0 }
  0x3e   : > { %2089 = dma.hbm_to_vmem [thread:$0]  (!%p2581_p6), %s2996_s6, 256, %s352_s27, [#allocation13], %s2981_s29, %s2981_s29, %s2982_s30  }
  0x3f   : > { %p2297_p13 = pneg %p2296_p12 }
  0x41   : > { %p2304_p8 = pnand %p2303_p4, %p2297_p13 }
  0x43   : > { %2307 = shalt.err (!%p2304_p8)
}
  0x44   : > { %s2997_s8 = sld [smem:[#allocation32_spill]]  ;;  %s1873_s23 = sadd.s32 4294967294, %s2460_s18  }
  0x45   : > { %s50_s26 = sadd.s32 1, %s2456_s17  ;;  %s59_s22 = sadd.s32 1, %s2448_s15 }
  0x46   : > { %p52_p7 = scmp.ge.s32.totalorder %s50_s26, 2  ;;  %p66_p9 = scmp.ne.s32.totalorder %s2448_s15, %s2444_s14 }
  0x47   : > { %p67_p10 = scmp.eq.s32.totalorder %s2460_s18, 0  ;;  %p72_p12 = scmp.ne.s32.totalorder %s2444_s14, %s2440_s13 }
  0x48   : > { %s3019_s26 = smov (%p52_p7, %s50_s26), 0  ;;  %p300_p4 = scmp.eq.s32.totalorder %s1873_s23, 1 }
  0x49   : > { %2998 = sst [smem:[#allocation25_spill]] %s3019_s26  ;;  %p2639_p11 = por %p67_p10, %p66_p9 }
  0x4a   : > { %2092 = dma.hbm_to_vmem [thread:$0]  (!%p2581_p6), %s2997_s8, 512, %s368_s12, [#allocation16], %s2981_s29, %s2981_s29, %s2982_s30  }
  0x4b   : > { %s54_s11 = ssub.s32 %s2456_s17, %s3019_s26  ;;  %p294_p6 = scmp.eq.s32.totalorder %s2567_s19, 1 }
  0x4c   : > { %p57_p13 = scmp.eq.s32.totalorder %s54_s11, 0  ;;  %p2650_p0 = por %p73_p1, %p72_p12 }
  0x4d   : > { %p2654_p2 = por %p294_p6, %p66_p9  ;;  %p2661_p8 = por %p300_p4, %p72_p12 }
  0x4e   : > { %s2659_s21 = scalar_select %p57_p13, %s2448_s15, %s59_s22  }
  0x4f   : > { %s3003_s27 = scalar_select %p2661_p8, 1, 0 }
  0x50   : > { %3002 = sst [smem:[#allocation26_spill]] %s2659_s21  ;;  %p2108_p7 = scmp.lt.s32.totalorder %s2460_s18, 2 }
  0x51   : > { %3004 = sst [smem:[#allocation27_spill]] %s3003_s27  ;;  %s384_s24 = sand.u32 1, %s2448_s15  }
  0x52   : > { %s1881_s29 = sshll.u32 %s2456_s17, 7  ;;  %s1880_s11 = sshll.u32 %s384_s24, 3 }
  0x53   : > { %s3005_s0 = sld [smem:[#allocation28_spill]]  ;;  %s388_s6 = scalar_lea.vmem [#allocation6], %s1880_s11 }
  0x54   : > { %s396_s8 = sshll.u32 %s388_s6, 4  ;;  %p2673_p9 = pnand %p2108_p7, %p2639_p11  ;;  %s397_s8 = int_to_ptr.vmem [resolvable:$true] %s396_s8 }
  0x55   : > { %s1882_s23 = sshll.u32 %s384_s24, 4  ;;  %s385_s22 = scalar_lea.sflag [#allocation7], %s384_s24 }
  0x56   : > { %p2310_p10 = pneg %p2673_p9  ;;  %s2321_s21 = scalar_lea.vmem %s397_s8, 128 }
  0x57   : > { %p2322_p12 = scmp.ne.s32.totalorder %s397_s8, %s2321_s21  ;;  %s2468_s2 = smov [#allocation6]  }
  0x58   : > { %s2326_s6 = sshll.u32 %s2468_s2, 4  ;;  %s2327_s6 = int_to_ptr.vmem [resolvable:$false] %s2326_s6 }
  0x59   : > { %s394_s4 = scalar_lea.hbm %s3005_s0, %s1881_s29  ;;  %p2324_p6 = pnand %p2322_p12, %p2310_p10 }
  0x5a   : > { %s2328_s29 = scalar_lea.vmem %s2327_s6, 256  ;;  %p2329_p11 = scmp.lt.s32.totalorder %s397_s8, %s2327_s6 }
  0x5b   : > { %p2325_p13 = pneg %p2324_p6  ;;  %p2330_p4 = scmp.lt.s32.totalorder %s2328_s29, %s2321_s21 }
  0x5d   : > { %p2331_p7 = por %p2330_p4, %p2329_p11 }
  0x5f   : > { %p2332_p5 = pnand %p2331_p7, %p2325_p13 }
  0x61   : > { %2335 = shalt.err (!%p2332_p5)
}
  0x62   : > { %2096 = dma.hbm_to_vmem [thread:$0]  (!%p2673_p9), %s394_s4, 128, %s397_s8, %s385_s22  }
  0x63   : > { %s1923_s30 = sshll.u32 %s2456_s17, 8  ;;  %s407_s28 = scalar_lea.vmem [#allocation9], %s1882_s23 }
  0x64   : > { %s416_s24 = sshll.u32 %s407_s28, 4  ;;  %s403_s11 = sand.u32 1, %s2460_s18   ;;  %s417_s24 = int_to_ptr.vmem [resolvable:$true] %s416_s24 }
  0x65   : > { %s415_s15 = scalar_lea.hbm %s2971_s1, %s1923_s30  ;;  %s404_s6 = scalar_lea.sflag [#allocation10], %s403_s11 }
  0x66   : > { %s2349_s21 = scalar_lea.vmem %s417_s24, 256  ;;  %s2469_s29 = smov [#allocation9]  }
  0x67   : > { %p2350_p12 = scmp.ne.s32.totalorder %s417_s24, %s2349_s21  ;;  %s2354_s27 = sshll.u32 %s2469_s29, 4  ;;  %s2355_s27 = int_to_ptr.vmem [resolvable:$false] %s2354_s27 }
  0x68   : > { %s2356_s4 = scalar_lea.vmem %s2355_s27, 512  ;;  %p2357_p13 = scmp.lt.s32.totalorder %s417_s24, %s2355_s27 }
  0x69   : > { %p2352_p5 = pnand %p2350_p12, %p2310_p10  ;;  %p2358_p11 = scmp.lt.s32.totalorder %s2356_s4, %s2349_s21 }
  0x6b   : > { %p2353_p6 = pneg %p2352_p5  ;;  %p2359_p4 = por %p2358_p11, %p2357_p13 }
  0x6d   : > { %p2360_p7 = pnand %p2359_p4, %p2353_p6 }
  0x6f   : > { %2363 = shalt.err (!%p2360_p7)
}
  0x70   : > { %s3007_s0 = smov 8   ;;  %s3008_s8 = smov 128  }
  0x71   : > { %2099 = dma.hbm_to_vmem [thread:$0]  (!%p2673_p9), %s415_s15, 256, %s417_s24, %s404_s6, %s3008_s8, %s3008_s8, %s3007_s0  }
  0x72   : > { %428 = sbr.rel (%p2572_p3) target bundleno = 2357 (0x935), region = 60  ;;  %s2700_s23 = sand.u32 (!%p2572_p3), 1, %s2444_s14  }
  0x73   : > { %s1886_s27 = sshll.u32 (!%p2572_p3), %s2700_s23, 3  ;;  %s431_s22 = scalar_lea.sflag (!%p2572_p3), [#allocation7], %s2700_s23 }
  0x74   : > { %s2706_s30 = scalar_lea.vmem (!%p2572_p3), [#allocation6], %s1886_s27 }
  0x77   : > { %2415 = dma.done.wait (%p2650_p0), %s431_s22, 128  }
  0x78   : > { %2417 = vsyncadd (%p2650_p0), %s431_s22, 4294967168  ;;  %s439_s15 = sand.u32 1, %s2567_s19   ;;  %s1887_s20 = sshll.u32 %s2700_s23, 4 }
  0x79   : > { %s440_s26 = scalar_lea.sflag [#allocation10], %s439_s15  ;;  %s443_s28 = scalar_lea.vmem [#allocation9], %s1887_s20 }
  0x7a   : > { %2419 = dma.done.wait (%p2650_p0), %s440_s26, 256  }
  0x7b   : > { %2421 = vsyncadd (%p2650_p0), %s440_s26, 4294967040 }
  0x7c   : > { %2423 = dma.done.wait (%p73_p1), [#allocation10], 512  }
  0x7d   : > { %2425 = vsyncadd (%p73_p1), [#allocation10], 4294966784 }
  0x7e   : > { %2427 = dma.done.wait (%p73_p1), [#allocation13], 512  }
  0x7f   : > { %2429 = vsyncadd (%p73_p1), [#allocation13], 4294966784 }
  0x80   : > { %2431 = dma.done.wait (%p73_p1), [#allocation16], 512  }
  0x81   : > { %2433 = vsyncadd (%p73_p1), [#allocation16], 4294966784  ;;  %vm518_vm0 = vcmask 261120   ;;  %v2470_v0 = vmov 0.0   ;;  %vm2471_vm1 = vmmov 0   ;;  %v510_v1 = vld [vmem:[#allocation11 + $0x18] sm:$0xff] }
  0x82   : > { %1966 = vmatprep.subr.mxu0 %v2470_v0  ;;  %1974 = vmatprep.mubr.msk.f32.mxu0 %vm2471_vm1, %v2470_v0  ;;  %603 = vst.msk [vmem:[#allocation5] sm:$0xff] %vm518_vm0, %v2470_v0  ;;  %v607_v2 = vld [vmem:[#allocation12 + $0x8] sm:$0xff]  ;;  %v509_v3 = vld [vmem:[#allocation11 + $0x10] sm:$0xff]  ;;  %v606_v4 = vld [vmem:[#allocation12] sm:$0xff]  ;;  %vm615_vm2 = vcmask 130048   ;;  %vm782_vm3 = vcmask 64512  }
  0x83   : > { %1967 = vmatpush3.msra.mxu0 %v510_v1  ;;  %1977 = vmatprep.subr.mxu1 %v607_v2  ;;  %v604_v5 = vld [vmem:[%s443_s28] sm:$0xff]  ;;  %v508_v6 = vld [vmem:[#allocation11 + $0x8] sm:$0xff]  ;;  %v506_v9 = vld [vmem:[%s2706_s30] sm:$0xff]  ;;  %s2472_s2 = smov 120   ;;  %s2473_s6 = smov 112   ;;  %vm594_vm4 = vcmask 7168  }
  0x84   : > { %1968 = vmatprep.subr.mxu0 %v2470_v0  ;;  %1978 = vmatpush3.msra.mxu1 %v607_v2  ;;  %v605_v7 = vld [vmem:[%s443_s28 + $0x8] sm:$0xff]  ;;  %v507_v8 = vld [vmem:[#allocation11] sm:$0xff]  ;;  %v697_v21 = vld [vmem:[#allocation14] sm:$0xff]  ;;  %v2474_v29 = vmov -inf   ;;  %599 = vst.msk [vmem:[#allocation4] sm:$0xff] %vm594_vm4, %v2470_v0  ;;  %v2475_v33 = vmov 0  }
  0x85   : > { %1969 = vmatpush3.msra.mxu0 %v509_v3  ;;  %1979 = vmatprep.subr.mxu1 %v606_v4  ;;  %v1895_v10 = vld [vmem:[%s2975_s5] ss:$0 sm:$0xff]  ;;  %v698_v20 = vld [vmem:[#allocation14 + $0x8] sm:$0xff]  ;;  %595 = vst.msk [vmem:[#allocation3] sm:$0xff] %vm594_vm4, %v2474_v29  ;;  %596 = vst.msk [vmem:[#allocation3 + $0x8] sm:$0xff] %vm594_vm4, %v2474_v29  ;;  %s2476_s4 = smov 104  }
  0x86   : > { %1970 = vmatprep.subr.mxu0 %v2470_v0  ;;  %1980 = vmatpush3.msra.mxu1 %v606_v4  ;;  %v1893_v12 = vld [vmem:[%s2973_s3] ss:$0 sm:$0xff]  ;;  %597 = vst.msk [vmem:[#allocation3 + $0x10] sm:$0xff] %vm594_vm4, %v2474_v29  ;;  %598 = vst.msk [vmem:[#allocation3 + $0x18] sm:$0xff] %vm594_vm4, %v2474_v29  ;;  %s2477_s0 = smov 8   ;;  %s2478_s8 = smov 16  }
  0x87   : > { %1981 = vmatprep.mubr.msk.f32.mxu1 %vm615_vm2, %v604_v5  ;;  %1971 = vmatpush3.msra.mxu0 %v508_v6  ;;  %600 = vst.msk [vmem:[#allocation4 + $0x8] sm:$0xff] %vm594_vm4, %v2470_v0  ;;  %601 = vst.msk [vmem:[#allocation4 + $0x10] sm:$0xff] %vm594_vm4, %v2470_v0  ;;  %v1898_v35 = vld [vmem:[%s2977_s7] ss:$0 sm:$0xff]  ;;  %vm1171_vm5 = vcmask 130112   ;;  %vm1374_vm6 = vcmask 195712  }
  0x88   : > { %1982 = vmatmul.mubr.msk.f32.vlgmr.msra.gmra.mxu1 %vm615_vm2, %v605_v7  ;;  %1972 = vmatprep.subr.mxu0 %v2470_v0  ;;  %602 = vst.msk [vmem:[#allocation4 + $0x18] sm:$0xff] %vm594_vm4, %v2470_v0  ;;  %s2479_s22 = smov 24   ;;  %vm1577_vm7 = vcmask 261312   ;;  %s1920_s20 = sshll.u32 %s2452_s16, 7 }
  0x89   : > { %1973 = vmatpush3.msra.mxu0 %v507_v8  ;;  %1988 = vmatprep.mubr.msk.f32.mxu1 %vm615_vm2, %v604_v5  ;;  %s500_s26 = scalar_lea.vmem [#allocation17], %s1886_s27  ;;  %s2927_s24 = scalar_lea.hbm %s2980_s10, %s1920_s20 }
  0x8a   : > { %1975 = vmatmul.mubr.msk.f32.vlgmr.msra.gmra.mxu0 %vm518_vm0, %v506_v9  ;;  %1991 = vmatprep.subr.mxu0 %v2470_v0  ;;  %s1725_s28 = sshll.u32 %s500_s26, 4  ;;  %s1711_s11 = scalar_lea.sflag [#allocation8], %s2700_s23  ;;  %s1726_s28 = int_to_ptr.vmem [resolvable:$true] %s1725_s28 }
  0x8b   : > { %1995 = vmatprep.mubr.msk.f32.mxu0 %vm2471_vm1, %v2470_v0  ;;  %1984 = vmatprep.subr.mxu1 %v698_v20  ;;  %s2480_s16 = smov [#allocation17]  }
  0x8c   : > { %1985 = vmatpush3.msra.mxu1 %v698_v20  ;;  %2178 = vset.pattern.permute.xlu0 %v2475_v33  ;;  %v2807_v39 = vld [vmem:[#allocation3] sm:$0xff]  ;;  %v1054_v59 = vld [vmem:[#allocation3 + $0x8] sm:$0xff]  ;;  %s2368_s27 = sshll.u32 %s2480_s16, 4  ;;  %s2369_s27 = int_to_ptr.vmem [resolvable:$false] %s2368_s27 }
  0x8d   : > { %1986 = vmatprep.subr.mxu1 %v697_v21  ;;  %2179 = vset.pattern.permute.xlu1 %v2475_v33  ;;  %v2838_v50 = vld [vmem:[#allocation3 + $0x10] sm:$0xff]  ;;  %p2371_p9 = scmp.lt.s32.totalorder %s1726_s28, %s2369_s27 }
  0x8e   : > { %1987 = vmatpush3.msra.mxu1 %v697_v21  ;;  %v1071_v29 = vld [vmem:[#allocation4 + $0x8] sm:$0xff] }
  0x8f   : > { %1989 = vmatmul.mubr.msk.f32.vlgmr.msra.gmra.mxu1 %vm615_vm2, %v605_v7  ;;  %1998 = vmatprep.subr.mxu1 %v2470_v0 }
  0x90   : > { %2002 = vmatprep.mubr.msk.f32.mxu1 %vm2471_vm1, %v2470_v0 }
 0x148   : > { %v1983_v11 = vpop.f32.mrf.mxu1 }
 0x149   : > { %v2752_v13 = vadd.f32 %v1983_v11, %v1895_v10 }
 0x14a   : > { %v588_v14 = vpop.f32.mrf.mxu0  ;;  %v688_v15 = vpop.f32.mrf.mxu1 }
 0x14b   : > { %975 = vrot.lane.b32.xlu1 %v2752_v13, %s2472_s2  ;;  %v589_v16 = vadd.f32 %v1893_v12, %v588_v14  ;;  %v2756_v17 = vadd.f32 %v1895_v10, %v688_v15  ;;  %1992 = vmatpush3.xpose.msk.msra.mxu0 %vm782_vm3, %v2752_v13 }
 0x14c   : > { %v1976_v18 = vpop.f32.mrf.mxu0  ;;  %1993 = vmatprep.subr.mxu0 %v2470_v0 }
 0x14d   : > { %v592_v19 = vmul.f32 0.35355338, %v589_v16 }
 0x14f   : > { %593 = vst.msk [vmem:[#allocation2] sm:$0xff] %vm518_vm0, %v592_v19  ;;  %973 = vrot.lane.b32.xlu1 %v2756_v17, %s2472_s2  ;;  %1994 = vmatpush3.xpose.msk.msra.mxu0 %vm782_vm3, %v2756_v17  ;;  %v1990_v34 = vpop.f32.mrf.mxu1 }
 0x150   : > { %2019 = vmatprep.subr.mxu0 %v2470_v0  ;;  %v2803_v36 = vadd.f32 %v1990_v34, %v1898_v35  ;;  %v1276_v34 = vld [vmem:[#allocation4 + $0x10] sm:$0xff] }
 0x151   : > { %v772_v43 = vpop.f32.mrf.mxu1 }
 0x152   : > { %1999 = vmatpush3.msra.mxu1 %v2803_v36  ;;  %v2817_v44 = vadd.f32 %v1898_v35, %v772_v43 }
 0x153   : > { %1180 = vrot.lane.b32.xlu1 %v2752_v13, %s2473_s6  ;;  %2000 = vmatprep.subr.mxu1 %v2470_v0 }
 0x154   : > { %2001 = vmatpush3.msra.mxu1 %v2817_v44 }
 0x155   : > { %2005 = vmatprep.subr.mxu1 %v2470_v0 }
 0x156   : > { %v969_v22 = vld [vmem:[#allocation2] sm:$0xff] }
 0x157   : > { %971 = vrot.lane.b32.xlu1 %v969_v22, %s2472_s2  ;;  %1996 = vmatmul.mubr.msk.f32.vlgmr.msra.gmra.mxu0 %vm782_vm3, %v969_v22 }
 0x158   : > { %2023 = vmatprep.mubr.msk.f32.mxu0 %vm2471_vm1, %v2470_v0 }
 0x15b   : > { %1178 = vrot.lane.b32.xlu1 %v2756_v17, %s2473_s6 }
 0x15f   : > { %1176 = vrot.lane.b32.xlu1 %v969_v22, %s2473_s6 }
 0x1bd   : > { %v976_v23 = vpop.permute.xlu1 %975 }
 0x1c1   : > { %v974_v24 = vpop.permute.xlu1 %973 }
 0x1c5   : > { %v1181_v25 = vpop.permute.xlu1 %1180 }
 0x1c6   : > { %2020 = vmatpush3.xpose.msk.msra.mxu0 %vm782_vm3, %v1181_v25 }
 0x1c7   : > { %2021 = vmatprep.subr.mxu0 %v2470_v0 }
 0x1c9   : > { %v972_v26 = vpop.permute.xlu1 %971 }
 0x1cd   : > { %v1179_v27 = vpop.permute.xlu1 %1178 }
 0x1ce   : > { %2022 = vmatpush3.xpose.msk.msra.mxu0 %vm782_vm3, %v1179_v27  ;;  %v1462_v27 = vld [vmem:[#allocation3 + $0x18] sm:$0xff] }
 0x1cf   : > { %2040 = vmatprep.subr.mxu0 %v2470_v0 }
 0x1d1   : > { %v1177_v28 = vpop.permute.xlu1 %1176 }
 0x1d2   : > { %2024 = vmatmul.mubr.msk.f32.vlgmr.msra.gmra.mxu0 %vm782_vm3, %v1177_v28 }
 0x1d3   : > { %2044 = vmatprep.mubr.msk.f32.mxu0 %vm2471_vm1, %v2470_v0 }
 0x217   : > { %v858_v30 = vpop.f32.mrf.mxu0 }
 0x218   : > { %v863_v31 = vsel %vm615_vm2, %v858_v30, -inf }
 0x219   : > { %864 = vmax.xlane.f32.xlu0 %v863_v31  ;;  %v1997_v32 = vpop.f32.mrf.mxu0 }
 0x292   : > { %v1254_v37 = vpop.f32.mrf.mxu0 }
 0x293   : > { %v1260_v45 = vsel %vm615_vm2, %v1254_v37, -inf }
 0x294   : > { %v2025_v38 = vpop.f32.mrf.mxu0 }
 0x2a2   : > { %v865_v40 = vpop.xlane.xlu0 %864 }
 0x2a3   : > { %v2810_v41 = vmax.f32 %v2807_v39, %v865_v40 }
 0x2a5   : > { %v867_v42 = vsub.f32 %v2807_v39, %v2810_v41  ;;  %968 = vst.msk [vmem:[#allocation3] sm:$0xff] %vm594_vm4, %v2810_v41  ;;  %872 = vperm.xlu0 %2178, %v2810_v41  }
 0x2c4   : > { %1261 = vmax.xlane.f32.xlu0 %v1260_v45  ;;  %v868_v45 = vmul.f32 1.442695, %v867_v42  ;;  %v878_v42 = vld [vmem:[#allocation4] sm:$0xff] }
 0x2da   : > { %1082 = vrot.lane.b32.xlu0 %v2803_v36, %s2472_s2 }
 0x2de   : > { %1379 = vrot.lane.b32.xlu0 %v969_v22, %s2476_s4 }
 0x320   : > { %v873_v46 = vpop.permute.xlu0 %872 }
 0x321   : > { %v875_v47 = vsub.f32 %v858_v30, %v873_v46 }
 0x323   : > { %v876_v48 = vmul.f32 1.442695, %v875_v47 }
 0x325   : > { %2180 = vpow2.f32 %v876_v48 }
 0x332   : > { %v2825_v49 = vpop.eup %2180 }
 0x333   : > { %2003 = vmatmul.mubr.msk.f32.vlgmr.msra.gmra.mxu1 %vm615_vm2, %v2825_v49  ;;  %v880_v43 = vsel %vm615_vm2, %v2825_v49, 0.0 }
 0x334   : > { %2006 = vmatpush3.xpose.msk.msra.mxu1 %vm782_vm3, %v976_v23  ;;  %2009 = vmatprep.mubr.msk.f32.mxu1 %vm2471_vm1, %v2470_v0 }
 0x335   : > { %2007 = vmatprep.subr.mxu1 %v2470_v0 }
 0x338   : > { %2008 = vmatpush3.xpose.msk.msra.mxu1 %vm782_vm3, %v974_v24 }
 0x339   : > { %2012 = vmatprep.subr.mxu1 %v2470_v0 }
 0x33b   : > { %2010 = vmatmul.mubr.msk.f32.vlgmr.msra.gmra.mxu1 %vm782_vm3, %v972_v26 }
 0x33c   : > { %2016 = vmatprep.mubr.msk.f32.mxu1 %vm2471_vm1, %v2470_v0 }
 0x34d   : > { %v1262_v51 = vpop.xlane.xlu0 %1261 }
 0x34e   : > { %v2841_v52 = vmax.f32 %v2838_v50, %v1262_v51 }
 0x350   : > { %1376 = vst.msk [vmem:[#allocation3 + $0x10] sm:$0xff] %vm594_vm4, %v2841_v52  ;;  %v1264_v25 = vsub.f32 %v2838_v50, %v2841_v52 }
 0x351   : > { %v1083_v53 = vpop.permute.xlu0 %1082 }
 0x352   : > { %2013 = vmatpush3.msra.mxu1 %v1083_v53  ;;  %v1265_v26 = vmul.f32 1.442695, %v1264_v25 }
 0x353   : > { %2014 = vmatprep.subr.mxu1 %v2470_v0 }
 0x3f3   : > { %v2846_v54 = vpop.f32.mrf.mxu1 }
 0x3f5   : > { %v2004_v55 = vpop.f32.mrf.mxu1 }
 0x3fb   : > { %v1049_v56 = vpop.f32.mrf.mxu1 }
 0x3fc   : > { %v1055_v57 = vsel %vm615_vm2, %v1049_v56, -inf }
 0x3fd   : > { %1056 = vmax.xlane.f32.xlu1 %v1055_v57  ;;  %v2011_v58 = vpop.f32.mrf.mxu1  ;;  %v959_v57 = vld [vmem:[#allocation5] sm:$0xff] }
 0x486   : > { %v1057_v60 = vpop.xlane.xlu1 %1056 }
 0x487   : > { %v1058_v61 = vmax.f32 %v1054_v59, %v1057_v60 }
 0x489   : > { %v1059_v62 = vsub.f32 %v1054_v59, %v1058_v61  ;;  %1173 = vst.msk [vmem:[#allocation3 + $0x8] sm:$0xff] %vm594_vm4, %v1058_v61  ;;  %1064 = vperm.xlu1 %2179, %v1058_v61  }
 0x48b   : > { %v1060_v22 = vmul.f32 1.442695, %v1059_v62 }
 0x48d   : > { %1269 = vperm.xlu1 %2179, %v2841_v52  }
 0x491   : > { %1080 = vrot.lane.b32.xlu1 %v2817_v44, %s2472_s2  ;;  %s2364_s2 = scalar_lea.vmem %s1726_s28, 128 }
 0x492   : > { %p2365_p1 = scmp.ne.s32.totalorder %s1726_s28, %s2364_s2 }
 0x494   : > { %p2366_p3 = pnand %p2365_p1, %p2654_p2 }
 0x495   : > { %1285 = vrot.lane.b32.xlu1 %v2803_v36, %s2473_s6 }
 0x496   : > { %p2367_p0 = pneg %p2366_p3 }
 0x499   : > { %1283 = vrot.lane.b32.xlu1 %v2817_v44, %s2473_s6  ;;  %s2370_s6 = scalar_lea.vmem %s2369_s27, 256 }
 0x49a   : > { %p2372_p10 = scmp.lt.s32.totalorder %s2370_s6, %s2364_s2 }
 0x49c   : > { %p2373_p12 = por %p2372_p10, %p2371_p9 }
 0x49d   : > { %1383 = vrot.lane.b32.xlu1 %v2752_v13, %s2476_s4  ;;  %v1380_v13 = vpop.permute.xlu0 %1379 }
 0x49e   : > { %p2374_p5 = pnand %p2373_p12, %p2367_p0 }
 0x4a1   : > { %1381 = vrot.lane.b32.xlu1 %v2756_v17, %s2476_s4 }
 0x504   : > { %v1065_v63 = vpop.permute.xlu1 %1064 }
 0x505   : > { %v1067_v1 = vsub.f32 %v1049_v56, %v1065_v63 }
 0x507   : > { %v1068_v2 = vmul.f32 1.442695, %v1067_v1 }
 0x508   : > { %v1270_v3 = vpop.permute.xlu1 %1269 }
 0x509   : > { %2182 = vpow2.f32 %v1068_v2  ;;  %v1272_v4 = vsub.f32 %v1254_v37, %v1270_v3  ;;  %v1479_v3 = vld [vmem:[#allocation4 + $0x18] sm:$0xff] }
 0x50b   : > { %v1273_v5 = vmul.f32 1.442695, %v1272_v4 }
 0x50c   : > { %v1081_v6 = vpop.permute.xlu1 %1080 }
 0x50d   : > { %2184 = vpow2.f32 %v1273_v5  ;;  %2015 = vmatpush3.msra.mxu1 %v1081_v6 }
 0x50e   : > { %2026 = vmatprep.subr.mxu1 %v2470_v0  ;;  %2186 = vpow2.f32 %v1060_v22  ;;  %v1626_v22 = vld [vmem:[#allocation15 + $0x10] sm:$0xff] }
 0x50f   : > { %2188 = vpow2.f32 %v1265_v26 }
 0x510   : > { %v1286_v7 = vpop.permute.xlu1 %1285  ;;  %2190 = vpow2.f32 %v868_v45 }
 0x514   : > { %v1284_v8 = vpop.permute.xlu1 %1283 }
 0x516   : > { %v2183_v9 = vpop.eup %2182 }
 0x517   : > { %2017 = vmatmul.mubr.msk.f32.vlgmr.msra.gmra.mxu1 %vm615_vm2, %v2183_v9  ;;  %v1073_v21 = vsel %vm615_vm2, %v2183_v9, 0.0 }
 0x518   : > { %2027 = vmatpush3.msra.mxu1 %v1286_v7  ;;  %2030 = vmatprep.mubr.msk.f32.mxu1 %vm2471_vm1, %v2470_v0  ;;  %v1384_v10 = vpop.permute.xlu1 %1383 }
 0x519   : > { %2028 = vmatprep.subr.mxu1 %v2470_v0 }
 0x51a   : > { %v2185_v11 = vpop.eup %2184  ;;  %2029 = vmatpush3.msra.mxu1 %v1284_v8 }
 0x51b   : > { %2033 = vmatprep.subr.mxu1 %v2470_v0  ;;  %2031 = vmatmul.mubr.msk.f32.vlgmr.msra.gmra.mxu1 %vm615_vm2, %v2185_v11  ;;  %v1278_v23 = vsel %vm615_vm2, %v2185_v11, 0.0  ;;  %v2187_v24 = vpop.eup %2186 }
 0x51c   : > { %2034 = vmatpush3.xpose.msk.msra.mxu1 %vm782_vm3, %v1384_v10  ;;  %2037 = vmatprep.mubr.msk.f32.mxu1 %vm2471_vm1, %v2470_v0  ;;  %v1382_v12 = vpop.permute.xlu1 %1381  ;;  %v1072_v31 = vmul.f32 %v2187_v24, %v1071_v29  ;;  %v2189_v32 = vpop.eup %2188 }
 0x51d   : > { %2035 = vmatprep.subr.mxu1 %v2470_v0  ;;  %v1277_v37 = vmul.f32 %v2189_v32, %v1276_v34 }
 0x520   : > { %2036 = vmatpush3.xpose.msk.msra.mxu1 %vm782_vm3, %v1382_v12 }
 0x523   : > { %2038 = vmatmul.mubr.msk.f32.vlgmr.msra.gmra.mxu1 %vm782_vm3, %v1380_v13 }
 0x5d7   : > { %v2874_v14 = vpop.f32.mrf.mxu1 }
 0x5d9   : > { %v2018_v15 = vpop.f32.mrf.mxu1 }
 0x5db   : > { %v2876_v16 = vpop.f32.mrf.mxu1 }
 0x5dd   : > { %v2032_v17 = vpop.f32.mrf.mxu1 }
 0x5e3   : > { %v1457_v18 = vpop.f32.mrf.mxu1 }
 0x5e4   : > { %v1463_v19 = vsel %vm615_vm2, %v1457_v18, -inf }
 0x5e5   : > { %1464 = vmax.xlane.f32.xlu1 %v1463_v19  ;;  %v2039_v20 = vpop.f32.mrf.mxu1 }
 0x5e9   : > { %1074 = vadd.xlane.f32.xlu1 %v1073_v21  ;;  %v1627_v21 = vld [vmem:[#allocation15 + $0x18] sm:$0xff] }
 0x5ed   : > { %1279 = vadd.xlane.f32.xlu1 %v1278_v23  ;;  %v1625_v23 = vld [vmem:[#allocation15 + $0x8] sm:$0xff] }
 0x5fe   : > { %1162 = vperm.xlu1 %2179, %v2187_v24   ;;  %v1624_v24 = vld [vmem:[#allocation15] sm:$0xff] }
 0x66e   : > { %v1465_v28 = vpop.xlane.xlu1 %1464 }
 0x66f   : > { %v1466_v30 = vmax.f32 %v1462_v27, %v1465_v28 }
 0x671   : > { %1579 = vst.msk [vmem:[#allocation3 + $0x18] sm:$0xff] %vm594_vm4, %v1466_v30  ;;  %1472 = vperm.xlu0 %2178, %v1466_v30   ;;  %v1467_v46 = vsub.f32 %v1462_v27, %v1466_v30 }
 0x672   : > { %v1075_v33 = vpop.xlane.xlu1 %1074 }
 0x673   : > { %v1076_v35 = vadd.f32 %v1075_v33, %v1072_v31  ;;  %v1468_v47 = vmul.f32 1.442695, %v1467_v46 }
 0x675   : > { %1077 = vst.msk [vmem:[#allocation4 + $0x8] sm:$0xff] %vm594_vm4, %v1076_v35  ;;  %1488 = vrot.lane.b32.xlu0 %v2803_v36, %s2476_s4  ;;  %2192 = vpow2.f32 %v1468_v47  ;;  %v2191_v36 = vpop.eup %2190  ;;  %v1917_v47 = vld [vmem:[%s2979_s9] ss:$0 sm:$0xff] }
 0x676   : > { %v1280_v38 = vpop.xlane.xlu1 %1279  ;;  %v879_v53 = vmul.f32 %v2191_v36, %v878_v42 }
 0x677   : > { %v1281_v40 = vadd.f32 %v1280_v38, %v1277_v37 }
 0x679   : > { %1282 = vst.msk [vmem:[#allocation4 + $0x10] sm:$0xff] %vm594_vm4, %v1281_v40  ;;  %1486 = vrot.lane.b32.xlu0 %v2817_v44, %s2476_s4 }
 0x67a   : > { %v1163_v2 = vpop.permute.xlu1 %1162 }
 0x67c   : > { %v1594_v15 = vld [vmem:[#allocation4 + $0x8] sm:$0xff] }
 0x680   : > { %v1604_v62 = vld [vmem:[#allocation4 + $0x10] sm:$0xff] }
 0x682   : > { %v2193_v48 = vpop.eup %2192 }
 0x683   : > { %v1480_v4 = vmul.f32 %v2193_v48, %v1479_v3 }
 0x698   : > { %881 = vadd.xlane.f32.xlu0 %v880_v43 }
 0x6ae   : > { %962 = vperm.xlu0 %2178, %v2191_v36  }
 0x6b2   : > { %1365 = vperm.xlu0 %2178, %v2189_v32  }
 0x6b6   : > { %1568 = vperm.xlu0 %2178, %v2193_v48  }
 0x6ec   : > { %v1473_v50 = vpop.permute.xlu0 %1472 }
 0x6ed   : > { %v1475_v51 = vsub.f32 %v1457_v18, %v1473_v50 }
 0x6ef   : > { %v1476_v44 = vmul.f32 1.442695, %v1475_v51 }
 0x6f0   : > { %v1489_v52 = vpop.permute.xlu0 %1488 }
 0x6f1   : > { %2194 = vpow2.f32 %v1476_v44  ;;  %2041 = vmatpush3.msra.mxu0 %v1489_v52 }
 0x6f2   : > { %2042 = vmatprep.subr.mxu0 %v2470_v0 }
 0x6f4   : > { %v1487_v49 = vpop.permute.xlu0 %1486 }
 0x6f5   : > { %2043 = vmatpush3.msra.mxu0 %v1487_v49 }
 0x6f6   : > { %2047 = vmatprep.subr.mxu0 %v2470_v0 }
 0x6fe   : > { %v2195_v39 = vpop.eup %2194 }
 0x6ff   : > { %2045 = vmatmul.mubr.msk.f32.vlgmr.msra.gmra.mxu0 %vm615_vm2, %v2195_v39  ;;  %v1481_v41 = vsel %vm615_vm2, %v2195_v39, 0.0 }
 0x700   : > { %1482 = vadd.xlane.f32.xlu1 %v1481_v41  ;;  %2055 = vmatprep.mubr.msk.f32.mxu0 %vm2471_vm1, %v2470_v0 }
 0x701   : > { %2048 = vmatpush3.msra.mxu0 %v1627_v21 }
 0x702   : > { %2049 = vmatprep.subr.mxu0 %v2470_v0 }
 0x703   : > { %2050 = vmatpush3.msra.mxu0 %v1626_v22 }
 0x704   : > { %2051 = vmatprep.subr.mxu0 %v2470_v0 }
 0x705   : > { %2052 = vmatpush3.msra.mxu0 %v1625_v23 }
 0x706   : > { %2053 = vmatprep.subr.mxu0 %v2470_v0 }
 0x707   : > { %2054 = vmatpush3.msra.mxu0 %v1624_v24 }
 0x711   : > { %1167 = vrot.lane.b32.xlu1 %v2874_v14, %s2477_s0 }
 0x715   : > { %1370 = vrot.lane.b32.xlu1 %v2876_v16, %s2478_s8 }
 0x721   : > { %v882_v55 = vpop.xlane.xlu0 %881 }
 0x722   : > { %v883_v56 = vadd.f32 %v882_v55, %v879_v53 }
 0x724   : > { %885 = vst.msk [vmem:[#allocation4] sm:$0xff] %vm594_vm4, %v883_v56 }
 0x729   : > { %v963_v58 = vpop.permute.xlu0 %962 }
 0x72a   : > { %v965_v59 = vmul.f32 %v963_v58, %v959_v57 }
 0x72b   : > { %v1584_v60 = vld [vmem:[#allocation4] sm:$0xff] }
 0x72c   : > { %v966_v61 = vadd.f32 %v965_v59, %v2846_v54  ;;  %2196 = vrcp.f32 %v1584_v60 }
 0x72d   : > { %2198 = vrcp.f32 %v1604_v62  ;;  %v1366_v10 = vpop.permute.xlu0 %1365 }
 0x72e   : > { %967 = vst.msk [vmem:[#allocation5] sm:$0xff] %vm782_vm3, %v966_v61  ;;  %2200 = vrcp.f32 %v1594_v15 }
 0x731   : > { %v1569_v26 = vpop.permute.xlu0 %1568 }
 0x735   : > { %v1159_v6 = vld [vmem:[#allocation5] sm:$0xff] }
 0x736   : > { %v1165_v8 = vmul.f32 %v1163_v2, %v1159_v6 }
 0x739   : > { %v2197_v63 = vpop.eup %2196 }
 0x73a   : > { %1588 = vperm.xlu0 %2178, %v2197_v63   ;;  %v2199_v1 = vpop.eup %2198 }
 0x73b   : > { %v2201_v19 = vpop.eup %2200 }
 0x73e   : > { %1608 = vperm.xlu0 %2178, %v2199_v1  }
 0x789   : > { %v1483_v5 = vpop.xlane.xlu1 %1482 }
 0x78a   : > { %v1484_v7 = vadd.f32 %v1483_v5, %v1480_v4 }
 0x78c   : > { %1485 = vst.msk [vmem:[#allocation4 + $0x18] sm:$0xff] %vm594_vm4, %v1484_v7 }
 0x78d   : > { %v1168_v54 = vpop.permute.xlu1 %1167 }
 0x78e   : > { %v1170_v9 = vadd.f32 %v1168_v54, %v1165_v8 }
 0x790   : > { %1172 = vst.msk [vmem:[#allocation5] sm:$0xff] %vm1171_vm5, %v1170_v9 }
 0x791   : > { %v1371_v13 = vpop.permute.xlu1 %1370 }
 0x793   : > { %v1614_v16 = vld [vmem:[#allocation4 + $0x18] sm:$0xff] }
 0x794   : > { %2202 = vrcp.f32 %v1614_v16 }
 0x797   : > { %v1362_v11 = vld [vmem:[#allocation5] sm:$0xff] }
 0x798   : > { %v1368_v12 = vmul.f32 %v1366_v10, %v1362_v11 }
 0x79a   : > { %v1373_v14 = vadd.f32 %v1371_v13, %v1368_v12 }
 0x79c   : > { %1375 = vst.msk [vmem:[#allocation5] sm:$0xff] %vm1374_vm6, %v1373_v14 }
 0x7a1   : > { %v2203_v20 = vpop.eup %2202 }
 0x7a3   : > { %v1565_v25 = vld [vmem:[#allocation5] sm:$0xff] }
 0x7a4   : > { %v1571_v27 = vmul.f32 %v1569_v26, %v1565_v25 }
 0x7b5   : > { %v1589_v30 = vpop.permute.xlu0 %1588 }
 0x7b9   : > { %v1609_v0 = vpop.permute.xlu0 %1608 }
 0x7bf   : > { %v1561_v17 = vpop.f32.mrf.mxu0 }
 0x7c0   : > { %1573 = vrot.lane.b32.xlu1 %v1561_v17, %s2479_s22 }
 0x7c1   : > { %v2046_v18 = vpop.f32.mrf.mxu0 }
 0x7c4   : > { %1598 = vperm.xlu1 %2179, %v2201_v19  }
 0x7c8   : > { %1618 = vperm.xlu1 %2179, %v2203_v20  }
 0x832   : > { %v1574_v28 = vpop.permute.xlu1 %1573 }
 0x833   : > { %v1576_v29 = vadd.f32 %v1574_v28, %v1571_v27 }
 0x835   : > { %1578 = vst.msk [vmem:[#allocation5] sm:$0xff] %vm1577_vm7, %v1576_v29 }
 0x83c   : > { %v1583_v31 = vld [vmem:[#allocation5] sm:$0xff] }
 0x83d   : > { %v1591_v32 = vmul.f32 %v1589_v30, %v1583_v31 }
 0x83f   : > { %1592 = vst.msk [vmem:[#allocation5] sm:$0xff] %vm782_vm3, %v1591_v32  ;;  %v1599_v34 = vpop.permute.xlu1 %1598 }
 0x843   : > { %v1619_v43 = vpop.permute.xlu1 %1618 }
 0x846   : > { %v1593_v33 = vld [vmem:[#allocation5] sm:$0xff] }
 0x847   : > { %v1601_v35 = vmul.f32 %v1599_v34, %v1593_v33 }
 0x849   : > { %1602 = vst.msk [vmem:[#allocation5] sm:$0xff] %vm1171_vm5, %v1601_v35 }
 0x850   : > { %v1603_v37 = vld [vmem:[#allocation5] sm:$0xff] }
 0x851   : > { %v1611_v38 = vmul.f32 %v1609_v0, %v1603_v37 }
 0x853   : > { %1612 = vst.msk [vmem:[#allocation5] sm:$0xff] %vm1374_vm6, %v1611_v38 }
 0x85a   : > { %v1613_v40 = vld [vmem:[#allocation5] sm:$0xff] }
 0x85b   : > { %v1621_v45 = vmul.f32 %v1619_v43, %v1613_v40 }
 0x85d   : > { %1622 = vst.msk [vmem:[#allocation5] sm:$0xff] %vm1577_vm7, %v1621_v45 }
 0x864   : > { %v1623_v46 = vld [vmem:[#allocation5] sm:$0xff] }
 0x865   : > { %2056 = vmatmul.mubr.msk.f32.vlgmr.msra.gmra.mxu0 %vm518_vm0, %v1623_v46 }
 0x925   : > { %v1705_v36 = vpop.f32.mrf.mxu0 }
 0x926   : > { %v1706_v48 = vadd.f32 %v1917_v47, %v1705_v36 }
 0x927   : > { %v2057_v50 = vpop.f32.mrf.mxu0 }
 0x928   : > { %1709 = vst.msk [vmem:[%s500_s26] sm:$0xff] %vm518_vm0, %v1706_v48 }
 0x929   : > { %2377 = shalt.err (!%p2374_p5)
}
 0x92a   : > { %s2378_s21 = scalar_lea.hbm %s2927_s24, 128  ;;  %s2382_s4 = scalar_lea.hbm %s2980_s10, 256 }
 0x92b   : > { %p2379_p6 = scmp.ne.s32.totalorder %s2927_s24, %s2378_s21  ;;  %p2383_p4 = scmp.lt.s32.totalorder %s2927_s24, %s2980_s10 }
 0x92c   : > { %p2384_p7 = scmp.lt.s32.totalorder %s2382_s4, %s2378_s21 }
 0x92d   : > { %p2380_p13 = pnand %p2379_p6, %p2654_p2 }
 0x92e   : > { %p2385_p1 = por %p2384_p7, %p2383_p4 }
 0x92f   : > { %p2381_p11 = pneg %p2380_p13 }
 0x931   : > { %p2386_p3 = pnand %p2385_p1, %p2381_p11 }
 0x933   : > { %2389 = shalt.err (!%p2386_p3)
}
 0x934   : > { %2078 = dma.vmem_to_hbm [thread:$0]  (%p2654_p2), %s1726_s28, 128, %s2927_s24, %s1711_s11  }
 0x935 PF: > { %s1737_s30 = sand.u32 1, %s2440_s13   ;;  %p3010_p0 = scmp.ge.s32.totalorder %s2460_s18, 2 }
 0x936   : > { %s1738_s15 = scalar_lea.sflag [#allocation8], %s1737_s30 }
 0x937   : > { %p2101_p9 = pnand %p3010_p0, %p2661_p8 }
 0x939   : > { %p2102_p10 = pneg %p2101_p9 }
 0x93b   : > { %2435 = dma.done.wait (%p2102_p10), %s1738_s15, 128  }
 0x93c   : > { %2437 = vsyncadd (%p2102_p10), %s1738_s15, 4294967168  ;;  %s31_s18 = sadd.s32 1, %s2460_s18   ;;  %s3011_s20 = sld [smem:[#allocation24_spill]] }
 0x93d   : > { %p28_p12 = scmp.ge.s32.totalorder %s31_s18, 4   ;;  %s3012_s15 = sld [smem:[#allocation26_spill]] }
 0x93e   : > { %s3013_s12 = sld [smem:[#allocation25_spill]]  ;;  %s3014_s13 = smov %s2444_s14 }
 0x93f   : > { %s3016_s16 = smov %s2456_s17 }
 0x940   :  { %30 = sbr.rel (!%p28_p12) target bundleno = 16 (0x10), region = 148 }
 0x942   : > { %s3015_s14 = smov %s3011_s20 }
 0x944   : > { %s3017_s17 = smov %s3013_s12 }
 0x945   :  { %1743 = vsyncpa [#allocation7], 1 }
 0x946   :  { %1745 = vsyncpa [#allocation7 + $0x1], 1 }
 0x947   :  { %1746 = vsyncpa [#allocation10], 1 }
 0x948   :  { %1748 = vsyncpa [#allocation10 + $0x1], 1 }
 0x949   :  { %1749 = vsyncpa [#allocation13], 1 }
 0x94a   :  { %1750 = vsyncpa [#allocation16], 1 }
 0x94b   :  { %1751 = vsyncpa [#allocation8], 1 }
 0x94c   :  { %1753 = vsyncpa [#allocation8 + $0x1], 1 }

</bundles_post_ra>
